<compile_context>
chip_gen: v5e
topology: v5e:2x2
jax: 0.10.0
libtpu: 0.0.40
codegen_flags: <defaults>
</compile_context>

<pallas_src>
import functools

import jax
import jax.numpy as jnp
from jax import lax
from jax.experimental import pallas as pl
from jax.experimental.pallas import tpu as pltpu


# ------------------------------- fused kernel ------------------------------ #

def _fused_cross_attn_kernel(*refs, num_heads, head_dim, n_t, qkv_bias):
    if qkv_bias:
        (x_ref, wq_ref, wk_ref, wv_ref, wp_ref, bp_ref,
         bq_ref, bk_ref, bv_ref, o_ref) = refs
    else:
        x_ref, wq_ref, wk_ref, wv_ref, wp_ref, bp_ref, o_ref = refs
        bq_ref = bk_ref = bv_ref = None

    x = x_ref[...]                                        # (N, C) f32

    # qkv projections (scale is already folded into wq in the wrapper).
    q = jnp.dot(x, wq_ref[...], preferred_element_type=jnp.float32)
    k = jnp.dot(x, wk_ref[...], preferred_element_type=jnp.float32)
    v = jnp.dot(x, wv_ref[...], preferred_element_type=jnp.float32)
    if qkv_bias:
        q = q + bq_ref[...]
        k = k + bk_ref[...]
        v = v + bv_ref[...]

    # Token split: [template tokens | search tokens].
    q_t, q_s = q[:n_t, :], q[n_t:, :]
    k_t, k_s = k[:n_t, :], k[n_t:, :]
    v_t, v_s = v[:n_t, :], v[n_t:, :]

    def one_direction(q_blk, k_blk, v_blk):
        # Per-head attention, heads unrolled.  Head h lives in the contiguous
        # column chunk [h*d, (h+1)*d), so concatenating per-head outputs along
        # the lane dim IS the 'b h t d -> b t (h d)' rearrange.
        cols = []
        for h in range(num_heads):
            sl = slice(h * head_dim, (h + 1) * head_dim)
            s = lax.dot_general(q_blk[:, sl], k_blk[:, sl],
                                (((1,), (1,)), ((), ())),
                                preferred_element_type=jnp.float32)
            s = s - jnp.max(s, axis=-1, keepdims=True)
            p = jnp.exp(s)
            inv = pl.reciprocal(jnp.sum(p, axis=-1, keepdims=True), approx=True)
            p = p * inv
            cols.append(jnp.dot(p, v_blk[:, sl],
                                preferred_element_type=jnp.float32))
        return jnp.concatenate(cols, axis=-1)             # (tokens, C)

    # Template queries attend to search k/v, and vice versa.
    x_t = one_direction(q_t, k_s, v_s)                    # (n_t, C)
    x_s = one_direction(q_s, k_t, v_t)                    # (n_s, C)
    x_cat = jnp.concatenate([x_t, x_s], axis=0)           # (N, C)

    # Output projection (attn_drop / proj_drop are identity at p=0.0 / eval).
    out = jnp.dot(x_cat, wp_ref[...],
                  preferred_element_type=jnp.float32) + bp_ref[...]
    o_ref[...] = out.astype(o_ref.dtype)


# ------------------------------ module forward ----------------------------- #

def cross_attention_forward(x, params, num_heads, t_h, t_w, s_h, s_w,
                            qkv_bias=False):
    w_qkv, b_qkv, w_proj, b_proj = params
    B, N, C = x.shape
    head_dim = C // num_heads
    assert head_dim * num_heads == C
    scale = head_dim ** (-0.5)
    n_t = 2 * t_h * t_w

    # Split the qkv weight once (trace-time slices on the weights, not the
    # activations) and fold the attention scale into the q projection.
    w_q = w_qkv[:, :C] * scale
    w_k = w_qkv[:, C:2 * C]
    w_v = w_qkv[:, 2 * C:]

    args = [x, w_q, w_k, w_v, w_proj, b_proj.reshape(1, C)]
    in_specs = [
        pl.BlockSpec((None, N, C), lambda b: (b, 0, 0)),   # x, per-batch block
        pl.BlockSpec((C, C), lambda b: (0, 0)),            # w_q (scaled)
        pl.BlockSpec((C, C), lambda b: (0, 0)),            # w_k
        pl.BlockSpec((C, C), lambda b: (0, 0)),            # w_v
        pl.BlockSpec((C, C), lambda b: (0, 0)),            # w_proj
        pl.BlockSpec((1, C), lambda b: (0, 0)),            # b_proj
    ]
    if qkv_bias:
        b_q = (b_qkv[:C] * scale).reshape(1, C)
        b_k = b_qkv[C:2 * C].reshape(1, C)
        b_v = b_qkv[2 * C:].reshape(1, C)
        args += [b_q, b_k, b_v]
        in_specs += [pl.BlockSpec((1, C), lambda b: (0, 0))] * 3

    kern = functools.partial(_fused_cross_attn_kernel,
                             num_heads=num_heads, head_dim=head_dim,
                             n_t=n_t, qkv_bias=qkv_bias)

    return pl.pallas_call(
        kern,
        out_shape=jax.ShapeDtypeStruct((B, N, C), x.dtype),
        grid=(B,),
        in_specs=in_specs,
        out_specs=pl.BlockSpec((None, N, C), lambda b: (b, 0, 0)),
        compiler_params=pltpu.CompilerParams(
            dimension_semantics=("parallel",)),
    )(*args)


# ------------------------------ pure-JAX reference ------------------------- #

def reference_forward(x, params, num_heads, t_h, t_w, s_h, s_w):
    w_qkv, b_qkv, w_proj, b_proj = params
    B, N, C = x.shape
    d = C // num_heads
    scale = d ** (-0.5)
    qkv = x @ w_qkv + b_qkv
    qkv = qkv.reshape(B, N, 3, num_heads, d).transpose(2, 0, 3, 1, 4)
    q, k, v = qkv[0], qkv[1], qkv[2]
    n_t = t_h * t_w * 2
    q_t, q_s = q[:, :, :n_t], q[:, :, n_t:]
    # TODO(synk): the PyTorch module splits k/v with torch.split(..., dim=4)
    # using conv-downsampled lengths (((t_h+1)//2)**2*2, s_h*s_w//4); with a
    # plain Linear qkv this is not executable (dim 4 is out of range and the
    # lengths do not sum to N), so k/v are split along the token axis with the
    # same [2*t_h*t_w, s_h*s_w] partition as q.
    k_t, k_s = k[:, :, :n_t], k[:, :, n_t:]
    v_t, v_s = v[:, :, :n_t], v[:, :, n_t:]
    a1 = jax.nn.softmax(jnp.einsum('bhqd,bhkd->bhqk', q_t, k_s) * scale, axis=-1)
    x_t = jnp.einsum('bhqk,bhkd->bhqd', a1, v_s)
    a2 = jax.nn.softmax(jnp.einsum('bhqd,bhkd->bhqk', q_s, k_t) * scale, axis=-1)
    x_s = jnp.einsum('bhqk,bhkd->bhqd', a2, v_t)
    x_t = x_t.transpose(0, 2, 1, 3).reshape(B, n_t, C)
    x_s = x_s.transpose(0, 2, 1, 3).reshape(B, N - n_t, C)
    xo = jnp.concatenate([x_t, x_s], axis=1)
    return xo @ w_proj + b_proj


# ----------------------------------- main ----------------------------------- #

if __name__ == "__main__":
    B, C, num_heads = 2, 32, 4
    t_h = t_w = 4
    s_h = s_w = 8
    N = 2 * t_h * t_w + s_h * s_w           # 96 tokens

    key = jax.random.PRNGKey(0)
    k1, k2, k3, kx = jax.random.split(key, 4)
    w_qkv = jax.random.normal(k1, (C, 3 * C), jnp.float32) * 0.02
    b_qkv = jnp.zeros((3 * C,), jnp.float32)            # qkv_bias=False
    w_proj = jax.random.normal(k2, (C, C), jnp.float32) * 0.02
    b_proj = jax.random.normal(k3, (C,), jnp.float32) * 0.02
    params = (w_qkv, b_qkv, w_proj, b_proj)

    x = jax.random.normal(kx, (B, N, C), jnp.float32)

    fwd = jax.jit(lambda xx, pp: cross_attention_forward(
        xx, pp, num_heads, t_h, t_w, s_h, s_w, qkv_bias=False))
    out = jax.block_until_ready(fwd(x, params))

    ref = reference_forward(x, params, num_heads, t_h, t_w, s_h, s_w)
    assert out.shape == (B, N, C), out.shape
    # Tolerance slightly relaxed from 1e-5 because the softmax denominator uses
    # the EUP approximate reciprocal; everything else is exact f32.
    max_err = float(jnp.max(jnp.abs(out - ref)))
    assert jnp.allclose(out, ref, atol=1e-4, rtol=1e-4), max_err

    print("KERNEL_OK")
</pallas_src>

<mosaic_0001>
module attributes {stable_mosaic.version = 11 : i64} {
  func.func @_fused_cross_attn_kernel(%arg0: i32, %arg1: memref<1x96x32xf32, #tpu.memory_space<vmem>>, %arg2: memref<32x32xf32, #tpu.memory_space<vmem>>, %arg3: memref<32x32xf32, #tpu.memory_space<vmem>>, %arg4: memref<32x32xf32, #tpu.memory_space<vmem>>, %arg5: memref<32x32xf32, #tpu.memory_space<vmem>>, %arg6: memref<1x32xf32, #tpu.memory_space<vmem>>, %arg7: memref<1x96x32xf32, #tpu.memory_space<vmem>>) attributes {dimension_semantics = [#tpu.dimension_semantics<parallel>], iteration_bounds = array<i64: 2>, scalar_prefetch = 0 : i64, scratch_operands = 0 : i64, tpu.core_type = #tpu.core_type<tc>, window_params = [{transform_indices = @transform_0, window_bounds = array<i64: 1, 96, 32>}, {pipeline_mode = #tpu.pipeline_mode<synchronous>, transform_indices = @transform_1, window_bounds = array<i64: 32, 32>}, {pipeline_mode = #tpu.pipeline_mode<synchronous>, transform_indices = @transform_2, window_bounds = array<i64: 32, 32>}, {pipeline_mode = #tpu.pipeline_mode<synchronous>, transform_indices = @transform_3, window_bounds = array<i64: 32, 32>}, {pipeline_mode = #tpu.pipeline_mode<synchronous>, transform_indices = @transform_4, window_bounds = array<i64: 32, 32>}, {pipeline_mode = #tpu.pipeline_mode<synchronous>, transform_indices = @transform_5, window_bounds = array<i64: 1, 32>}, {transform_indices = @transform_6, window_bounds = array<i64: 1, 96, 32>}]} {
    %c0 = arith.constant 0 : index
    %c0_0 = arith.constant 0 : index
    %c0_1 = arith.constant 0 : index
    %0 = vector.load %arg1[%c0, %c0_0, %c0_1] : memref<1x96x32xf32, #tpu.memory_space<vmem>>, vector<1x96x32xf32>
    %1 = vector.shape_cast %0 : vector<1x96x32xf32> to vector<96x32xf32>
    %c0_2 = arith.constant 0 : index
    %c0_3 = arith.constant 0 : index
    %2 = vector.load %arg2[%c0_2, %c0_3] : memref<32x32xf32, #tpu.memory_space<vmem>>, vector<32x32xf32>
    %cst = arith.constant dense<0.000000e+00> : vector<96x32xf32>
    %3 = tpu.matmul %1, %2, %cst {dimension_numbers = #tpu.dot_dimension_numbers<[1], [0], [0], [1], [0, 0, 1, 1], [], []>} : vector<96x32xf32>, vector<32x32xf32>, vector<96x32xf32> -> vector<96x32xf32>
    %c0_4 = arith.constant 0 : index
    %c0_5 = arith.constant 0 : index
    %4 = vector.load %arg3[%c0_4, %c0_5] : memref<32x32xf32, #tpu.memory_space<vmem>>, vector<32x32xf32>
    %cst_6 = arith.constant dense<0.000000e+00> : vector<96x32xf32>
    %5 = tpu.matmul %1, %4, %cst_6 {dimension_numbers = #tpu.dot_dimension_numbers<[1], [0], [0], [1], [0, 0, 1, 1], [], []>} : vector<96x32xf32>, vector<32x32xf32>, vector<96x32xf32> -> vector<96x32xf32>
    %c0_7 = arith.constant 0 : index
    %c0_8 = arith.constant 0 : index
    %6 = vector.load %arg4[%c0_7, %c0_8] : memref<32x32xf32, #tpu.memory_space<vmem>>, vector<32x32xf32>
    %cst_9 = arith.constant dense<0.000000e+00> : vector<96x32xf32>
    %7 = tpu.matmul %1, %6, %cst_9 {dimension_numbers = #tpu.dot_dimension_numbers<[1], [0], [0], [1], [0, 0, 1, 1], [], []>} : vector<96x32xf32>, vector<32x32xf32>, vector<96x32xf32> -> vector<96x32xf32>
    %8 = vector.extract_strided_slice %3 {offsets = [0, 0], sizes = [32, 32], strides = [1, 1]} : vector<96x32xf32> to vector<32x32xf32>
    %9 = vector.extract_strided_slice %3 {offsets = [32, 0], sizes = [64, 32], strides = [1, 1]} : vector<96x32xf32> to vector<64x32xf32>
    %10 = vector.extract_strided_slice %5 {offsets = [0, 0], sizes = [32, 32], strides = [1, 1]} : vector<96x32xf32> to vector<32x32xf32>
    %11 = vector.extract_strided_slice %5 {offsets = [32, 0], sizes = [64, 32], strides = [1, 1]} : vector<96x32xf32> to vector<64x32xf32>
    %12 = vector.extract_strided_slice %7 {offsets = [0, 0], sizes = [32, 32], strides = [1, 1]} : vector<96x32xf32> to vector<32x32xf32>
    %13 = vector.extract_strided_slice %7 {offsets = [32, 0], sizes = [64, 32], strides = [1, 1]} : vector<96x32xf32> to vector<64x32xf32>
    %14 = vector.extract_strided_slice %8 {offsets = [0, 0], sizes = [32, 8], strides = [1, 1]} : vector<32x32xf32> to vector<32x8xf32>
    %15 = vector.extract_strided_slice %11 {offsets = [0, 0], sizes = [64, 8], strides = [1, 1]} : vector<64x32xf32> to vector<64x8xf32>
    %cst_10 = arith.constant dense<0.000000e+00> : vector<32x64xf32>
    %16 = tpu.matmul %14, %15, %cst_10 {dimension_numbers = #tpu.dot_dimension_numbers<[1], [1], [0], [0], [0, 0, 1, 0], [], []>} : vector<32x8xf32>, vector<64x8xf32>, vector<32x64xf32> -> vector<32x64xf32>
    %cst_11 = arith.constant dense<0xFF800000> : vector<32xf32>
    %17 = vector.multi_reduction <maximumf>, %16, %cst_11 [1] : vector<32x64xf32> to vector<32xf32>
    %18 = vector.shape_cast %17 : vector<32xf32> to vector<32x1xf32>
    %19 = vector.broadcast %18 : vector<32x1xf32> to vector<32x64xf32>
    %20 = arith.subf %16, %19 : vector<32x64xf32>
    %21 = math.exp %20 : vector<32x64xf32>
    %cst_12 = arith.constant dense<0.000000e+00> : vector<32xf32>
    %22 = vector.multi_reduction <add>, %21, %cst_12 [1] : vector<32x64xf32> to vector<32xf32>
    %23 = vector.shape_cast %22 : vector<32xf32> to vector<32x1xf32>
    %24 = tpu.reciprocal %23 {approx = true} : vector<32x1xf32> -> vector<32x1xf32>
    %25 = vector.broadcast %24 : vector<32x1xf32> to vector<32x64xf32>
    %26 = arith.mulf %21, %25 : vector<32x64xf32>
    %27 = vector.extract_strided_slice %13 {offsets = [0, 0], sizes = [64, 8], strides = [1, 1]} : vector<64x32xf32> to vector<64x8xf32>
    %cst_13 = arith.constant dense<0.000000e+00> : vector<32x8xf32>
    %28 = tpu.matmul %26, %27, %cst_13 {dimension_numbers = #tpu.dot_dimension_numbers<[1], [0], [0], [1], [0, 0, 1, 1], [], []>} : vector<32x64xf32>, vector<64x8xf32>, vector<32x8xf32> -> vector<32x8xf32>
    %29 = vector.extract_strided_slice %8 {offsets = [0, 8], sizes = [32, 8], strides = [1, 1]} : vector<32x32xf32> to vector<32x8xf32>
    %30 = vector.extract_strided_slice %11 {offsets = [0, 8], sizes = [64, 8], strides = [1, 1]} : vector<64x32xf32> to vector<64x8xf32>
    %cst_14 = arith.constant dense<0.000000e+00> : vector<32x64xf32>
    %31 = tpu.matmul %29, %30, %cst_14 {dimension_numbers = #tpu.dot_dimension_numbers<[1], [1], [0], [0], [0, 0, 1, 0], [], []>} : vector<32x8xf32>, vector<64x8xf32>, vector<32x64xf32> -> vector<32x64xf32>
    %cst_15 = arith.constant dense<0xFF800000> : vector<32xf32>
    %32 = vector.multi_reduction <maximumf>, %31, %cst_15 [1] : vector<32x64xf32> to vector<32xf32>
    %33 = vector.shape_cast %32 : vector<32xf32> to vector<32x1xf32>
    %34 = vector.broadcast %33 : vector<32x1xf32> to vector<32x64xf32>
    %35 = arith.subf %31, %34 : vector<32x64xf32>
    %36 = math.exp %35 : vector<32x64xf32>
    %cst_16 = arith.constant dense<0.000000e+00> : vector<32xf32>
    %37 = vector.multi_reduction <add>, %36, %cst_16 [1] : vector<32x64xf32> to vector<32xf32>
    %38 = vector.shape_cast %37 : vector<32xf32> to vector<32x1xf32>
    %39 = tpu.reciprocal %38 {approx = true} : vector<32x1xf32> -> vector<32x1xf32>
    %40 = vector.broadcast %39 : vector<32x1xf32> to vector<32x64xf32>
    %41 = arith.mulf %36, %40 : vector<32x64xf32>
    %42 = vector.extract_strided_slice %13 {offsets = [0, 8], sizes = [64, 8], strides = [1, 1]} : vector<64x32xf32> to vector<64x8xf32>
    %cst_17 = arith.constant dense<0.000000e+00> : vector<32x8xf32>
    %43 = tpu.matmul %41, %42, %cst_17 {dimension_numbers = #tpu.dot_dimension_numbers<[1], [0], [0], [1], [0, 0, 1, 1], [], []>} : vector<32x64xf32>, vector<64x8xf32>, vector<32x8xf32> -> vector<32x8xf32>
    %44 = vector.extract_strided_slice %8 {offsets = [0, 16], sizes = [32, 8], strides = [1, 1]} : vector<32x32xf32> to vector<32x8xf32>
    %45 = vector.extract_strided_slice %11 {offsets = [0, 16], sizes = [64, 8], strides = [1, 1]} : vector<64x32xf32> to vector<64x8xf32>
    %cst_18 = arith.constant dense<0.000000e+00> : vector<32x64xf32>
    %46 = tpu.matmul %44, %45, %cst_18 {dimension_numbers = #tpu.dot_dimension_numbers<[1], [1], [0], [0], [0, 0, 1, 0], [], []>} : vector<32x8xf32>, vector<64x8xf32>, vector<32x64xf32> -> vector<32x64xf32>
    %cst_19 = arith.constant dense<0xFF800000> : vector<32xf32>
    %47 = vector.multi_reduction <maximumf>, %46, %cst_19 [1] : vector<32x64xf32> to vector<32xf32>
    %48 = vector.shape_cast %47 : vector<32xf32> to vector<32x1xf32>
    %49 = vector.broadcast %48 : vector<32x1xf32> to vector<32x64xf32>
    %50 = arith.subf %46, %49 : vector<32x64xf32>
    %51 = math.exp %50 : vector<32x64xf32>
    %cst_20 = arith.constant dense<0.000000e+00> : vector<32xf32>
    %52 = vector.multi_reduction <add>, %51, %cst_20 [1] : vector<32x64xf32> to vector<32xf32>
    %53 = vector.shape_cast %52 : vector<32xf32> to vector<32x1xf32>
    %54 = tpu.reciprocal %53 {approx = true} : vector<32x1xf32> -> vector<32x1xf32>
    %55 = vector.broadcast %54 : vector<32x1xf32> to vector<32x64xf32>
    %56 = arith.mulf %51, %55 : vector<32x64xf32>
    %57 = vector.extract_strided_slice %13 {offsets = [0, 16], sizes = [64, 8], strides = [1, 1]} : vector<64x32xf32> to vector<64x8xf32>
    %cst_21 = arith.constant dense<0.000000e+00> : vector<32x8xf32>
    %58 = tpu.matmul %56, %57, %cst_21 {dimension_numbers = #tpu.dot_dimension_numbers<[1], [0], [0], [1], [0, 0, 1, 1], [], []>} : vector<32x64xf32>, vector<64x8xf32>, vector<32x8xf32> -> vector<32x8xf32>
    %59 = vector.extract_strided_slice %8 {offsets = [0, 24], sizes = [32, 8], strides = [1, 1]} : vector<32x32xf32> to vector<32x8xf32>
    %60 = vector.extract_strided_slice %11 {offsets = [0, 24], sizes = [64, 8], strides = [1, 1]} : vector<64x32xf32> to vector<64x8xf32>
    %cst_22 = arith.constant dense<0.000000e+00> : vector<32x64xf32>
    %61 = tpu.matmul %59, %60, %cst_22 {dimension_numbers = #tpu.dot_dimension_numbers<[1], [1], [0], [0], [0, 0, 1, 0], [], []>} : vector<32x8xf32>, vector<64x8xf32>, vector<32x64xf32> -> vector<32x64xf32>
    %cst_23 = arith.constant dense<0xFF800000> : vector<32xf32>
    %62 = vector.multi_reduction <maximumf>, %61, %cst_23 [1] : vector<32x64xf32> to vector<32xf32>
    %63 = vector.shape_cast %62 : vector<32xf32> to vector<32x1xf32>
    %64 = vector.broadcast %63 : vector<32x1xf32> to vector<32x64xf32>
    %65 = arith.subf %61, %64 : vector<32x64xf32>
    %66 = math.exp %65 : vector<32x64xf32>
    %cst_24 = arith.constant dense<0.000000e+00> : vector<32xf32>
    %67 = vector.multi_reduction <add>, %66, %cst_24 [1] : vector<32x64xf32> to vector<32xf32>
    %68 = vector.shape_cast %67 : vector<32xf32> to vector<32x1xf32>
    %69 = tpu.reciprocal %68 {approx = true} : vector<32x1xf32> -> vector<32x1xf32>
    %70 = vector.broadcast %69 : vector<32x1xf32> to vector<32x64xf32>
    %71 = arith.mulf %66, %70 : vector<32x64xf32>
    %72 = vector.extract_strided_slice %13 {offsets = [0, 24], sizes = [64, 8], strides = [1, 1]} : vector<64x32xf32> to vector<64x8xf32>
    %cst_25 = arith.constant dense<0.000000e+00> : vector<32x8xf32>
    %73 = tpu.matmul %71, %72, %cst_25 {dimension_numbers = #tpu.dot_dimension_numbers<[1], [0], [0], [1], [0, 0, 1, 1], [], []>} : vector<32x64xf32>, vector<64x8xf32>, vector<32x8xf32> -> vector<32x8xf32>
    %74 = tpu.concatenate %28, %43, %58, %73 in 1 : vector<32x8xf32>, vector<32x8xf32>, vector<32x8xf32>, vector<32x8xf32> -> vector<32x32xf32>
    %75 = vector.extract_strided_slice %9 {offsets = [0, 0], sizes = [64, 8], strides = [1, 1]} : vector<64x32xf32> to vector<64x8xf32>
    %76 = vector.extract_strided_slice %10 {offsets = [0, 0], sizes = [32, 8], strides = [1, 1]} : vector<32x32xf32> to vector<32x8xf32>
    %cst_26 = arith.constant dense<0.000000e+00> : vector<64x32xf32>
    %77 = tpu.matmul %75, %76, %cst_26 {dimension_numbers = #tpu.dot_dimension_numbers<[1], [1], [0], [0], [0, 0, 1, 0], [], []>} : vector<64x8xf32>, vector<32x8xf32>, vector<64x32xf32> -> vector<64x32xf32>
    %cst_27 = arith.constant dense<0xFF800000> : vector<64xf32>
    %78 = vector.multi_reduction <maximumf>, %77, %cst_27 [1] : vector<64x32xf32> to vector<64xf32>
    %79 = vector.shape_cast %78 : vector<64xf32> to vector<64x1xf32>
    %80 = vector.broadcast %79 : vector<64x1xf32> to vector<64x32xf32>
    %81 = arith.subf %77, %80 : vector<64x32xf32>
    %82 = math.exp %81 : vector<64x32xf32>
    %cst_28 = arith.constant dense<0.000000e+00> : vector<64xf32>
    %83 = vector.multi_reduction <add>, %82, %cst_28 [1] : vector<64x32xf32> to vector<64xf32>
    %84 = vector.shape_cast %83 : vector<64xf32> to vector<64x1xf32>
    %85 = tpu.reciprocal %84 {approx = true} : vector<64x1xf32> -> vector<64x1xf32>
    %86 = vector.broadcast %85 : vector<64x1xf32> to vector<64x32xf32>
    %87 = arith.mulf %82, %86 : vector<64x32xf32>
    %88 = vector.extract_strided_slice %12 {offsets = [0, 0], sizes = [32, 8], strides = [1, 1]} : vector<32x32xf32> to vector<32x8xf32>
    %cst_29 = arith.constant dense<0.000000e+00> : vector<64x8xf32>
    %89 = tpu.matmul %87, %88, %cst_29 {dimension_numbers = #tpu.dot_dimension_numbers<[1], [0], [0], [1], [0, 0, 1, 1], [], []>} : vector<64x32xf32>, vector<32x8xf32>, vector<64x8xf32> -> vector<64x8xf32>
    %90 = vector.extract_strided_slice %9 {offsets = [0, 8], sizes = [64, 8], strides = [1, 1]} : vector<64x32xf32> to vector<64x8xf32>
    %91 = vector.extract_strided_slice %10 {offsets = [0, 8], sizes = [32, 8], strides = [1, 1]} : vector<32x32xf32> to vector<32x8xf32>
    %cst_30 = arith.constant dense<0.000000e+00> : vector<64x32xf32>
    %92 = tpu.matmul %90, %91, %cst_30 {dimension_numbers = #tpu.dot_dimension_numbers<[1], [1], [0], [0], [0, 0, 1, 0], [], []>} : vector<64x8xf32>, vector<32x8xf32>, vector<64x32xf32> -> vector<64x32xf32>
    %cst_31 = arith.constant dense<0xFF800000> : vector<64xf32>
    %93 = vector.multi_reduction <maximumf>, %92, %cst_31 [1] : vector<64x32xf32> to vector<64xf32>
    %94 = vector.shape_cast %93 : vector<64xf32> to vector<64x1xf32>
    %95 = vector.broadcast %94 : vector<64x1xf32> to vector<64x32xf32>
    %96 = arith.subf %92, %95 : vector<64x32xf32>
    %97 = math.exp %96 : vector<64x32xf32>
    %cst_32 = arith.constant dense<0.000000e+00> : vector<64xf32>
    %98 = vector.multi_reduction <add>, %97, %cst_32 [1] : vector<64x32xf32> to vector<64xf32>
    %99 = vector.shape_cast %98 : vector<64xf32> to vector<64x1xf32>
    %100 = tpu.reciprocal %99 {approx = true} : vector<64x1xf32> -> vector<64x1xf32>
    %101 = vector.broadcast %100 : vector<64x1xf32> to vector<64x32xf32>
    %102 = arith.mulf %97, %101 : vector<64x32xf32>
    %103 = vector.extract_strided_slice %12 {offsets = [0, 8], sizes = [32, 8], strides = [1, 1]} : vector<32x32xf32> to vector<32x8xf32>
    %cst_33 = arith.constant dense<0.000000e+00> : vector<64x8xf32>
    %104 = tpu.matmul %102, %103, %cst_33 {dimension_numbers = #tpu.dot_dimension_numbers<[1], [0], [0], [1], [0, 0, 1, 1], [], []>} : vector<64x32xf32>, vector<32x8xf32>, vector<64x8xf32> -> vector<64x8xf32>
    %105 = vector.extract_strided_slice %9 {offsets = [0, 16], sizes = [64, 8], strides = [1, 1]} : vector<64x32xf32> to vector<64x8xf32>
    %106 = vector.extract_strided_slice %10 {offsets = [0, 16], sizes = [32, 8], strides = [1, 1]} : vector<32x32xf32> to vector<32x8xf32>
    %cst_34 = arith.constant dense<0.000000e+00> : vector<64x32xf32>
    %107 = tpu.matmul %105, %106, %cst_34 {dimension_numbers = #tpu.dot_dimension_numbers<[1], [1], [0], [0], [0, 0, 1, 0], [], []>} : vector<64x8xf32>, vector<32x8xf32>, vector<64x32xf32> -> vector<64x32xf32>
    %cst_35 = arith.constant dense<0xFF800000> : vector<64xf32>
    %108 = vector.multi_reduction <maximumf>, %107, %cst_35 [1] : vector<64x32xf32> to vector<64xf32>
    %109 = vector.shape_cast %108 : vector<64xf32> to vector<64x1xf32>
    %110 = vector.broadcast %109 : vector<64x1xf32> to vector<64x32xf32>
    %111 = arith.subf %107, %110 : vector<64x32xf32>
    %112 = math.exp %111 : vector<64x32xf32>
    %cst_36 = arith.constant dense<0.000000e+00> : vector<64xf32>
    %113 = vector.multi_reduction <add>, %112, %cst_36 [1] : vector<64x32xf32> to vector<64xf32>
    %114 = vector.shape_cast %113 : vector<64xf32> to vector<64x1xf32>
    %115 = tpu.reciprocal %114 {approx = true} : vector<64x1xf32> -> vector<64x1xf32>
    %116 = vector.broadcast %115 : vector<64x1xf32> to vector<64x32xf32>
    %117 = arith.mulf %112, %116 : vector<64x32xf32>
    %118 = vector.extract_strided_slice %12 {offsets = [0, 16], sizes = [32, 8], strides = [1, 1]} : vector<32x32xf32> to vector<32x8xf32>
    %cst_37 = arith.constant dense<0.000000e+00> : vector<64x8xf32>
    %119 = tpu.matmul %117, %118, %cst_37 {dimension_numbers = #tpu.dot_dimension_numbers<[1], [0], [0], [1], [0, 0, 1, 1], [], []>} : vector<64x32xf32>, vector<32x8xf32>, vector<64x8xf32> -> vector<64x8xf32>
    %120 = vector.extract_strided_slice %9 {offsets = [0, 24], sizes = [64, 8], strides = [1, 1]} : vector<64x32xf32> to vector<64x8xf32>
    %121 = vector.extract_strided_slice %10 {offsets = [0, 24], sizes = [32, 8], strides = [1, 1]} : vector<32x32xf32> to vector<32x8xf32>
    %cst_38 = arith.constant dense<0.000000e+00> : vector<64x32xf32>
    %122 = tpu.matmul %120, %121, %cst_38 {dimension_numbers = #tpu.dot_dimension_numbers<[1], [1], [0], [0], [0, 0, 1, 0], [], []>} : vector<64x8xf32>, vector<32x8xf32>, vector<64x32xf32> -> vector<64x32xf32>
    %cst_39 = arith.constant dense<0xFF800000> : vector<64xf32>
    %123 = vector.multi_reduction <maximumf>, %122, %cst_39 [1] : vector<64x32xf32> to vector<64xf32>
    %124 = vector.shape_cast %123 : vector<64xf32> to vector<64x1xf32>
    %125 = vector.broadcast %124 : vector<64x1xf32> to vector<64x32xf32>
    %126 = arith.subf %122, %125 : vector<64x32xf32>
    %127 = math.exp %126 : vector<64x32xf32>
    %cst_40 = arith.constant dense<0.000000e+00> : vector<64xf32>
    %128 = vector.multi_reduction <add>, %127, %cst_40 [1] : vector<64x32xf32> to vector<64xf32>
    %129 = vector.shape_cast %128 : vector<64xf32> to vector<64x1xf32>
    %130 = tpu.reciprocal %129 {approx = true} : vector<64x1xf32> -> vector<64x1xf32>
    %131 = vector.broadcast %130 : vector<64x1xf32> to vector<64x32xf32>
    %132 = arith.mulf %127, %131 : vector<64x32xf32>
    %133 = vector.extract_strided_slice %12 {offsets = [0, 24], sizes = [32, 8], strides = [1, 1]} : vector<32x32xf32> to vector<32x8xf32>
    %cst_41 = arith.constant dense<0.000000e+00> : vector<64x8xf32>
    %134 = tpu.matmul %132, %133, %cst_41 {dimension_numbers = #tpu.dot_dimension_numbers<[1], [0], [0], [1], [0, 0, 1, 1], [], []>} : vector<64x32xf32>, vector<32x8xf32>, vector<64x8xf32> -> vector<64x8xf32>
    %135 = tpu.concatenate %89, %104, %119, %134 in 1 : vector<64x8xf32>, vector<64x8xf32>, vector<64x8xf32>, vector<64x8xf32> -> vector<64x32xf32>
    %136 = tpu.concatenate %74, %135 in 0 : vector<32x32xf32>, vector<64x32xf32> -> vector<96x32xf32>
    %c0_42 = arith.constant 0 : index
    %c0_43 = arith.constant 0 : index
    %137 = vector.load %arg5[%c0_42, %c0_43] : memref<32x32xf32, #tpu.memory_space<vmem>>, vector<32x32xf32>
    %cst_44 = arith.constant dense<0.000000e+00> : vector<96x32xf32>
    %138 = tpu.matmul %136, %137, %cst_44 {dimension_numbers = #tpu.dot_dimension_numbers<[1], [0], [0], [1], [0, 0, 1, 1], [], []>} : vector<96x32xf32>, vector<32x32xf32>, vector<96x32xf32> -> vector<96x32xf32>
    %c0_45 = arith.constant 0 : index
    %c0_46 = arith.constant 0 : index
    %139 = vector.load %arg6[%c0_45, %c0_46] : memref<1x32xf32, #tpu.memory_space<vmem>>, vector<1x32xf32>
    %140 = vector.broadcast %139 : vector<1x32xf32> to vector<96x32xf32>
    %141 = arith.addf %138, %140 : vector<96x32xf32>
    %c0_47 = arith.constant 0 : index
    %c0_48 = arith.constant 0 : index
    %c0_49 = arith.constant 0 : index
    %142 = vector.load %arg7[%c0_47, %c0_48, %c0_49] : memref<1x96x32xf32, #tpu.memory_space<vmem>>, vector<1x96x32xf32>
    %143 = vector.shape_cast %142 : vector<1x96x32xf32> to vector<96x32xf32>
    %144 = vector.shape_cast %141 : vector<96x32xf32> to vector<1x96x32xf32>
    tpu.vector_store %arg7[%c0_47, %c0_48, %c0_49], %144 {strides = array<i32>} : memref<1x96x32xf32, #tpu.memory_space<vmem>>, vector<1x96x32xf32>,
    return
  }
  func.func @transform_0(%arg0: i32) -> (i32, i32, i32) {
    %c0_i32 = arith.constant 0 : i32
    %c0_i32_0 = arith.constant 0 : i32
    %c0_i32_1 = arith.constant 0 : i32
    return %arg0, %c0_i32, %c0_i32_0 : i32, i32, i32
  }
  func.func @transform_1(%arg0: i32) -> (i32, i32) {
    %c0_i32 = arith.constant 0 : i32
    %c0_i32_0 = arith.constant 0 : i32
    %c0_i32_1 = arith.constant 0 : i32
    return %c0_i32, %c0_i32_0 : i32, i32
  }
  func.func @transform_2(%arg0: i32) -> (i32, i32) {
    %c0_i32 = arith.constant 0 : i32
    %c0_i32_0 = arith.constant 0 : i32
    %c0_i32_1 = arith.constant 0 : i32
    return %c0_i32, %c0_i32_0 : i32, i32
  }
  func.func @transform_3(%arg0: i32) -> (i32, i32) {
    %c0_i32 = arith.constant 0 : i32
    %c0_i32_0 = arith.constant 0 : i32
    %c0_i32_1 = arith.constant 0 : i32
    return %c0_i32, %c0_i32_0 : i32, i32
  }
  func.func @transform_4(%arg0: i32) -> (i32, i32) {
    %c0_i32 = arith.constant 0 : i32
    %c0_i32_0 = arith.constant 0 : i32
    %c0_i32_1 = arith.constant 0 : i32
    return %c0_i32, %c0_i32_0 : i32, i32
  }
  func.func @transform_5(%arg0: i32) -> (i32, i32) {
    %c0_i32 = arith.constant 0 : i32
    %c0_i32_0 = arith.constant 0 : i32
    %c0_i32_1 = arith.constant 0 : i32
    return %c0_i32, %c0_i32_0 : i32, i32
  }
  func.func @transform_6(%arg0: i32) -> (i32, i32, i32) {
    %c0_i32 = arith.constant 0 : i32
    %c0_i32_0 = arith.constant 0 : i32
    %c0_i32_1 = arith.constant 0 : i32
    return %arg0, %c0_i32, %c0_i32_0 : i32, i32, i32
  }
}

</mosaic_0001>

<bundles_post_ra>
// kernel: _lambda_.1
= control target key start
LH: loop header
LB: loop body
LE: loop exit
PB: predicated region body
PF: predicated region fallthrough
CT: control target
= control target key end

     0   :  { %s3088_s21 = smov 0   ;;  %s4429_s0 = inlined_call_operand.vmem [shape: f32[2,96,32], index: 0, kind: input, shape index: {}]   ;;  %s4430_s1 = inlined_call_operand.vmem [shape: f32[32,32], index: 1, kind: input, shape index: {}]   ;;  %s4431_s2 = inlined_call_operand.vmem [shape: f32[32,32], index: 2, kind: input, shape index: {}]   ;;  %s4432_s3 = inlined_call_operand.vmem [shape: f32[32,32], index: 3, kind: input, shape index: {}]   ;;  %s4433_s4 = inlined_call_operand.vmem [shape: f32[32,32], index: 4, kind: input, shape index: {}]   ;;  %s4434_s5 = inlined_call_operand.vmem [shape: f32[1,32], index: 5, kind: input, shape index: {}]   ;;  %s4435_s6 = inlined_call_operand.vmem [shape: f32[2,96,32], index: 6, kind: output, shape index: {}]  }
   0x1 LB: > { %s2532_s22 = sadd.s32 4294967295, %s3045_s21   ;;  %p2536_p0 = scmp.ge.s32.totalorder %s3045_s21, 1  ;;  %s3045_s21 = sphi %s3088_s21, %s16_s21  }
   0x2   : > { %p212_p1 = scmp.lt.s32.totalorder %s3045_s21, 3 }
   0x4   : > { %p213_p2 = pnand %p2536_p0, %p212_p1 }
   0x6   : > { %216 = sbr.rel (%p213_p2) target bundleno = 2368 (0x940), region = 44 }
   0xb   : > { %v361_v0 = vld [vmem:[%s4431_s2 + $0x18] sm:$0xff]  ;;  %v360_v1 = vld [vmem:[%s4431_s2 + $0x10] sm:$0xff]  ;;  %p242_p3 = scmp.lt.s32.totalorder %s2532_s22, 1  ;;  %v359_v4 = vld [vmem:[%s4431_s2 + $0x8] sm:$0xff]  ;;  %vm268_vm0 = vcmask 261120   ;;  %s3047_s29 = smov 120  }
   0xc   : > { %374 = vmatpush.msra.mxu1 %v361_v0  ;;  %v267_v2 = vld [vmem:[%s4430_s1 + $0x18] sm:$0xff]  ;;  %v266_v3 = vld [vmem:[%s4430_s1 + $0x10] sm:$0xff]  ;;  %v265_v5 = vld [vmem:[%s4430_s1 + $0x8] sm:$0xff]  ;;  %s3048_s30 = smov 104   ;;  %vm472_vm1 = vcmask 64512   ;;  %s3049_s7 = smov 112  }
   0xd   : > { %s4448_s22 = smov (!%p242_p3, %s2532_s22), 1  ;;  %317 = vmatpush.msra.mxu0 %v267_v2  ;;  %v358_v6 = vld [vmem:[%s4431_s2] sm:$0xff]  ;;  %v418_v15 = vld [vmem:[%s4432_s3 + $0x18] sm:$0xff]  ;;  %v417_v17 = vld [vmem:[%s4432_s3 + $0x10] sm:$0xff]  ;;  %vm538_vm2 = vcmask 523264   ;;  %s3050_s8 = smov 16  }
   0xe   : > { %375 = vmatpush.msra.mxu1 %v360_v1  ;;  %s2741_s13 = smul.u32 96, %s4448_s22  ;;  %v264_v7 = vld [vmem:[%s4430_s1] sm:$0xff]  ;;  %431 = vmatpush.msra.mxu2 %v418_v15  ;;  %v416_v18 = vld [vmem:[%s4432_s3 + $0x8] sm:$0xff]  ;;  %s3051_s9 = smov 24   ;;  %vm1242_vm3 = vcmask 130048   ;;  %vm1247_vm4 = vcmask 195584  }
   0xf   : > { %318 = vmatpush.msra.mxu0 %v266_v3  ;;  %v415_v19 = vld [vmem:[%s4432_s3] sm:$0xff]  ;;  %s3052_s10 = smov 8  }
  0x10   : > { %376 = vmatpush.msra.mxu1 %v359_v4  ;;  %s3128_s18 = scalar_lea.vmem %s4429_s0, %s2741_s13  ;;  %432 = vmatpush.msra.mxu2 %v417_v17  ;;  %s4346_s26 = scalar_lea.vmem %s4435_s6, %s2741_s13 }
  0x11   : > { %319 = vmatpush.msra.mxu0 %v265_v5  ;;  %v252_v8 = vld [vmem:[%s3128_s18] sm:$0xff]  ;;  %v253_v9 = vld [vmem:[%s3128_s18 + $0x8] sm:$0xff]  ;;  %v254_v10 = vld [vmem:[%s3128_s18 + $0x10] sm:$0xff] }
  0x12   : > { %377 = vmatpush.msra.mxu1 %v358_v6  ;;  %v255_v11 = vld [vmem:[%s3128_s18 + $0x18] sm:$0xff]  ;;  %v256_v12 = vld [vmem:[%s3128_s18 + $0x20] sm:$0xff]  ;;  %v257_v13 = vld [vmem:[%s3128_s18 + $0x28] sm:$0xff]  ;;  %433 = vmatpush.msra.mxu2 %v416_v18 }
  0x13   : > { %2551 = vmatmul.msk.f32.vlgmr.msra.gmra.mxu1 %vm268_vm0, %v252_v8  ;;  %320 = vmatpush.msra.mxu0 %v264_v7  ;;  %v258_v14 = vld [vmem:[%s3128_s18 + $0x30] sm:$0xff]  ;;  %v259_v16 = vld [vmem:[%s3128_s18 + $0x38] sm:$0xff]  ;;  %v260_v20 = vld [vmem:[%s3128_s18 + $0x40] sm:$0xff] }
  0x14   : > { %2539 = vmatmul.msk.f32.vlgmr.msra.gmra.mxu0 %vm268_vm0, %v252_v8  ;;  %434 = vmatpush.msra.mxu2 %v415_v19  ;;  %v261_v21 = vld [vmem:[%s3128_s18 + $0x48] sm:$0xff]  ;;  %v262_v22 = vld [vmem:[%s3128_s18 + $0x50] sm:$0xff]  ;;  %v263_v23 = vld [vmem:[%s3128_s18 + $0x58] sm:$0xff] }
  0x15   : > { %2563 = vmatmul.msk.f32.vlgmr.msra.gmra.mxu2 %vm268_vm0, %v252_v8 }
  0x1b   : > { %2552 = vmatmul.msk.f32.gmra.mxu1 %vm268_vm0, %v253_v9 }
  0x1c   : > { %2540 = vmatmul.msk.f32.gmra.mxu0 %vm268_vm0, %v253_v9 }
  0x1d   : > { %2564 = vmatmul.msk.f32.gmra.mxu2 %vm268_vm0, %v253_v9 }
  0x23   : > { %2553 = vmatmul.msk.f32.gmra.mxu1 %vm268_vm0, %v254_v10 }
  0x24   : > { %2541 = vmatmul.msk.f32.gmra.mxu0 %vm268_vm0, %v254_v10 }
  0x25   : > { %2565 = vmatmul.msk.f32.gmra.mxu2 %vm268_vm0, %v254_v10 }
  0x2b   : > { %2554 = vmatmul.msk.f32.gmra.mxu1 %vm268_vm0, %v255_v11 }
  0x2c   : > { %2542 = vmatmul.msk.f32.gmra.mxu0 %vm268_vm0, %v255_v11 }
  0x2d   : > { %2566 = vmatmul.msk.f32.gmra.mxu2 %vm268_vm0, %v255_v11 }
  0x33   : > { %2555 = vmatmul.msk.f32.gmra.mxu1 %vm268_vm0, %v256_v12 }
  0x34   : > { %2543 = vmatmul.msk.f32.gmra.mxu0 %vm268_vm0, %v256_v12 }
  0x35   : > { %2567 = vmatmul.msk.f32.gmra.mxu2 %vm268_vm0, %v256_v12 }
  0x3b   : > { %2556 = vmatmul.msk.f32.gmra.mxu1 %vm268_vm0, %v257_v13 }
  0x3c   : > { %2544 = vmatmul.msk.f32.gmra.mxu0 %vm268_vm0, %v257_v13 }
  0x3d   : > { %2568 = vmatmul.msk.f32.gmra.mxu2 %vm268_vm0, %v257_v13 }
  0x43   : > { %2557 = vmatmul.msk.f32.gmra.mxu1 %vm268_vm0, %v258_v14 }
  0x44   : > { %2545 = vmatmul.msk.f32.gmra.mxu0 %vm268_vm0, %v258_v14 }
  0x45   : > { %2569 = vmatmul.msk.f32.gmra.mxu2 %vm268_vm0, %v258_v14 }
  0x4b   : > { %2558 = vmatmul.msk.f32.gmra.mxu1 %vm268_vm0, %v259_v16 }
  0x4c   : > { %2546 = vmatmul.msk.f32.gmra.mxu0 %vm268_vm0, %v259_v16 }
  0x4d   : > { %2570 = vmatmul.msk.f32.gmra.mxu2 %vm268_vm0, %v259_v16 }
  0x53   : > { %2559 = vmatmul.msk.f32.gmra.mxu1 %vm268_vm0, %v260_v20 }
  0x54   : > { %2547 = vmatmul.msk.f32.gmra.mxu0 %vm268_vm0, %v260_v20 }
  0x55   : > { %2571 = vmatmul.msk.f32.gmra.mxu2 %vm268_vm0, %v260_v20 }
  0x5b   : > { %2560 = vmatmul.msk.f32.gmra.mxu1 %vm268_vm0, %v261_v21 }
  0x5c   : > { %2548 = vmatmul.msk.f32.gmra.mxu0 %vm268_vm0, %v261_v21 }
  0x5d   : > { %2572 = vmatmul.msk.f32.gmra.mxu2 %vm268_vm0, %v261_v21 }
  0x63   : > { %2561 = vmatmul.msk.f32.gmra.mxu1 %vm268_vm0, %v262_v22 }
  0x64   : > { %2549 = vmatmul.msk.f32.gmra.mxu0 %vm268_vm0, %v262_v22 }
  0x65   : > { %2573 = vmatmul.msk.f32.gmra.mxu2 %vm268_vm0, %v262_v22 }
  0x6b   : > { %2562 = vmatmul.msk.f32.gmra.mxu1 %vm268_vm0, %v263_v23 }
  0x6c   : > { %2550 = vmatmul.msk.f32.gmra.mxu0 %vm268_vm0, %v263_v23 }
  0x6d   : > { %2574 = vmatmul.msk.f32.gmra.mxu2 %vm268_vm0, %v263_v23 }
  0x90   : > { %v3186_v24 = vpop.f32.mrf.mxu1 }
  0x91   : > { %v3188_v25 = vpop.f32.mrf.mxu0 }
  0x92   : > { %624 = vrot.lane.b32.xlu0 %v3188_v25, %s3047_s29 }
  0x98   : > { %v3193_v26 = vpop.f32.mrf.mxu1  ;;  %v3220_v35 = vpop.f32.mrf.mxu2 }
  0x99   : > { %v3195_v27 = vpop.f32.mrf.mxu0 }
  0x9a   : > { %626 = vrot.lane.b32.xlu2 %v3195_v27, %s3047_s29 }
  0xa0   : > { %v3200_v28 = vpop.f32.mrf.mxu1  ;;  %v3226_v37 = vpop.f32.mrf.mxu2 }
  0xa1   : > { %v3241_v42 = vpop.f32.mrf.mxu0 }
  0xa8   : > { %v3203_v29 = vpop.f32.mrf.mxu1  ;;  %v3232_v39 = vpop.f32.mrf.mxu2 }
  0xa9   : > { %v331_v49 = vpop.f32.mrf.mxu0 }
  0xb0   : > { %v391_v30 = vpop.f32.mrf.mxu1  ;;  %v3238_v41 = vpop.f32.mrf.mxu2 }
  0xb1   : > { %632 = vrot.lane.b32.xlu2 %v391_v30, %s3047_s29 }
  0xb8   : > { %v3207_v31 = vpop.f32.mrf.mxu1  ;;  %v3249_v43 = vpop.f32.mrf.mxu2 }
  0xb9   : > { %634 = vrot.lane.b32.xlu0 %v3207_v31, %s3047_s29 }
  0xc0   : > { %v3211_v32 = vpop.f32.mrf.mxu1  ;;  %v3256_v44 = vpop.f32.mrf.mxu2 }
  0xc1   : > { %636 = vrot.lane.b32.xlu2 %v3211_v32, %s3047_s29 }
  0xc8   : > { %v400_v33 = vpop.f32.mrf.mxu1  ;;  %v3265_v45 = vpop.f32.mrf.mxu2 }
  0xc9   : > { %638 = vrot.lane.b32.xlu0 %v400_v33, %s3047_s29 }
  0xd0   : > { %v3216_v34 = vpop.f32.mrf.mxu1  ;;  %v3274_v46 = vpop.f32.mrf.mxu2 }
  0xd1   : > { %640 = vrot.lane.b32.xlu0 %v3216_v34, %s3047_s29 }
  0xd8   : > { %v3222_v36 = vpop.f32.mrf.mxu1  ;;  %v3280_v47 = vpop.f32.mrf.mxu2 }
  0xd9   : > { %642 = vrot.lane.b32.xlu2 %v3222_v36, %s3047_s29 }
  0xe0   : > { %v409_v38 = vpop.f32.mrf.mxu1  ;;  %v3286_v48 = vpop.f32.mrf.mxu2 }
  0xe1   : > { %644 = vrot.lane.b32.xlu1 %v409_v38, %s3047_s29  ;;  %1024 = vrot.lane.b32.xlu0 %v409_v38, %s3048_s30 }
  0xe2   : > { %1022 = vrot.lane.b32.xlu2 %v3222_v36, %s3048_s30 }
  0xe8   : > { %v412_v40 = vpop.f32.mrf.mxu1  ;;  %v3291_v50 = vpop.f32.mrf.mxu2 }
  0xe9   : > { %838 = vrot.lane.b32.xlu1 %v409_v38, %s3049_s7  ;;  %2575 = vmatpush.xpose.msk.msra.mxu3 %vm472_vm1, %v412_v40 }
  0xea   : > { %646 = vrot.lane.b32.xlu0 %v412_v40, %s3047_s29  ;;  %1026 = vrot.lane.b32.xlu2 %v412_v40, %s3048_s30 }
  0xed   : > { %2576 = vmatpush.xpose.msk.msra.mxu3 %vm472_vm1, %v409_v38 }
  0xf0   : > { %v3294_v51 = vpop.f32.mrf.mxu2 }
  0xf1   : > { %832 = vrot.lane.b32.xlu1 %v400_v33, %s3049_s7  ;;  %2577 = vmatpush.xpose.msk.msra.mxu3 %vm472_vm1, %v3222_v36 }
  0xf2   : > { %840 = vrot.lane.b32.xlu0 %v412_v40, %s3049_s7  ;;  %628 = vrot.lane.b32.xlu2 %v3241_v42, %s3047_s29 }
  0xf4   : > { %v3306_v55 = vpop.permute.xlu2 %626 }
  0xf5   : > { %2578 = vmatpush.xpose.msk.msra.mxu3 %vm472_vm1, %v3216_v34 }
  0xf9   : > { %1012 = vrot.lane.b32.xlu1 %v391_v30, %s3048_s30  ;;  %2579 = vmatpush.xpose.msk.msra.mxu3 %vm472_vm1, %v400_v33 }
  0xfa   : > { %1018 = vrot.lane.b32.xlu2 %v400_v33, %s3048_s30 }
  0xfd   : > { %2580 = vmatpush.xpose.msk.msra.mxu3 %vm472_vm1, %v3211_v32 }
 0x101   : > { %826 = vrot.lane.b32.xlu1 %v391_v30, %s3049_s7  ;;  %2581 = vmatpush.xpose.msk.msra.mxu3 %vm472_vm1, %v3207_v31 }
 0x102   : > { %1016 = vrot.lane.b32.xlu2 %v3211_v32, %s3048_s30 }
 0x104   : > { %v3297_v52 = vpop.permute.xlu0 %624 }
 0x105   : > { %2582 = vmatpush.xpose.msk.msra.mxu3 %vm472_vm1, %v391_v30  ;;  %v3375_v30 = vpack.i.bf16 %v3291_v50, %v3294_v51 }
 0x108   : > { %2583 = vmatmul.msk.f32.vlgmr.msra.gmra.mxu3 %vm472_vm1, %v3188_v25 }
 0x109   : > { %820 = vrot.lane.b32.xlu1 %v3195_v27, %s3049_s7  ;;  %603 = vmatpush.msrb.mxu3 %v3294_v51 }
 0x10a   : > { %1014 = vrot.lane.b32.xlu2 %v3207_v31, %s3048_s30 }
 0x10b   : > { %604 = vmatpush.msrb.mxu3 %v3291_v50  ;;  %v633_v58 = vpop.permute.xlu2 %632 }
 0x10d   : > { %605 = vmatpush.msrb.mxu3 %v3286_v48 }
 0x10f   : > { %606 = vmatpush.msrb.mxu3 %v3280_v47 }
 0x110   : > { %2584 = vmatmul.msk.f32.gmra.mxu3 %vm472_vm1, %v3195_v27 }
 0x111   : > { %607 = vmatpush.msrb.mxu3 %v3274_v46 }
 0x112   : > { %1004 = vrot.lane.b32.xlu2 %v3188_v25, %s3048_s30 }
 0x113   : > { %608 = vmatpush.msrb.mxu3 %v3265_v45 }
 0x115   : > { %609 = vmatpush.msrb.mxu3 %v3256_v44 }
 0x117   : > { %610 = vmatpush.msrb.mxu3 %v3249_v43 }
 0x118   : > { %2585 = vmatmul.msk.f32.gmra.mxu3 %vm472_vm1, %v3241_v42 }
 0x11a   : > { %818 = vrot.lane.b32.xlu2 %v3188_v25, %s3049_s7 }
 0x11b   : > { %v637_v59 = vpop.permute.xlu2 %636 }
 0x120   : > { %2586 = vmatmul.msk.f32.gmra.mxu3 %vm472_vm1, %v331_v49 }
 0x122   : > { %1008 = vrot.lane.b32.xlu2 %v3241_v42, %s3048_s30 }
 0x12a   : > { %824 = vrot.lane.b32.xlu2 %v331_v49, %s3049_s7 }
 0x12b   : > { %v635_v53 = vpop.permute.xlu0 %634 }
 0x132   : > { %2757 = vrot.lane.b32.xlu2 %v3375_v30, %s3047_s29 }
 0x133   : > { %v643_v62 = vpop.permute.xlu2 %642 }
 0x13b   : > { %v639_v54 = vpop.permute.xlu0 %638 }
 0x13c   : > { %v3349_v9 = vpop.permute.xlu2 %1022 }
 0x143   : > { %v641_v56 = vpop.permute.xlu0 %640 }
 0x144   : > { %v3351_v11 = vpop.permute.xlu2 %1026 }
 0x14c   : > { %v3353_v13 = vpop.permute.xlu2 %628 }
 0x153   : > { %v3308_v57 = vpop.permute.xlu0 %1024  ;;  %v645_v61 = vpop.permute.xlu1 %644 }
 0x154   : > { %v3357_v15 = vpop.permute.xlu2 %1018 }
 0x15b   : > { %v839_v0 = vpop.permute.xlu1 %838 }
 0x15c   : > { %v647_v60 = vpop.permute.xlu0 %646  ;;  %v3360_v18 = vpop.permute.xlu2 %1016 }
 0x15d   : > { %2591 = vmatpush.xpose.msk.msra.mxu3 %vm472_vm1, %v647_v60 }
 0x161   : > { %2592 = vmatpush.xpose.msk.msra.mxu3 %vm472_vm1, %v645_v61 }
 0x163   : > { %v833_v19 = vpop.permute.xlu1 %832 }
 0x164   : > { %v841_v63 = vpop.permute.xlu0 %840  ;;  %v3366_v21 = vpop.permute.xlu2 %1014 }
 0x165   : > { %2593 = vmatpush.xpose.msk.msra.mxu3 %vm472_vm1, %v643_v62  ;;  %2607 = vmatpush.xpose.msk.msrb.mxu1 %vm472_vm1, %v841_v63 }
 0x169   : > { %2594 = vmatpush.xpose.msk.msra.mxu3 %vm472_vm1, %v641_v56  ;;  %2608 = vmatpush.xpose.msk.msrb.mxu1 %vm472_vm1, %v839_v0 }
 0x16b   : > { %v3369_v23 = vpop.permute.xlu1 %1012 }
 0x16c   : > { %v3371_v25 = vpop.permute.xlu2 %1004 }
 0x16d   : > { %2595 = vmatpush.xpose.msk.msra.mxu3 %vm472_vm1, %v639_v54 }
 0x171   : > { %2596 = vmatpush.xpose.msk.msra.mxu3 %vm472_vm1, %v637_v59 }
 0x174   : > { %v819_v33 = vpop.permute.xlu2 %818 }
 0x175   : > { %2597 = vmatpush.xpose.msk.msra.mxu3 %vm472_vm1, %v635_v53 }
 0x179   : > { %2598 = vmatpush.xpose.msk.msra.mxu3 %vm472_vm1, %v633_v58 }
 0x17c   : > { %v3391_v38 = vpop.permute.xlu2 %1008 }
 0x18b   : > { %v526_v1 = vpop.f32.mrf.mxu3 }
 0x18c   : > { %v539_v2 = vsel %vm538_vm2, %v526_v1, -inf }
 0x18d   : > { %540 = vmax.xlane.f32.xlu0 %v539_v2 }
 0x193   : > { %v3321_v3 = vpop.f32.mrf.mxu3 }
 0x194   : > { %v542_v4 = vsel %vm538_vm2, %v3321_v3, -inf }
 0x195   : > { %543 = vmax.xlane.f32.xlu0 %v542_v4 }
 0x19b   : > { %v3325_v5 = vpop.f32.mrf.mxu3 }
 0x19c   : > { %v545_v6 = vsel %vm538_vm2, %v3325_v5, -inf }
 0x19d   : > { %546 = vmax.xlane.f32.xlu1 %v545_v6 }
 0x1a3   : > { %v3329_v7 = vpop.f32.mrf.mxu3 }
 0x1a4   : > { %v548_v8 = vsel %vm538_vm2, %v3329_v7, -inf }
 0x1a5   : > { %549 = vmax.xlane.f32.xlu1 %v548_v8 }
 0x1a9   : > { %1020 = vrot.lane.b32.xlu0 %v3216_v34, %s3048_s30 }
 0x1b1   : > { %836 = vrot.lane.b32.xlu0 %v3222_v36, %s3049_s7 }
 0x1b9   : > { %834 = vrot.lane.b32.xlu0 %v3216_v34, %s3049_s7 }
 0x1be   : > { %1010 = vrot.lane.b32.xlu1 %v331_v49, %s3048_s30 }
 0x1c1   : > { %630 = vrot.lane.b32.xlu0 %v331_v49, %s3047_s29 }
 0x1c9   : > { %830 = vrot.lane.b32.xlu0 %v3211_v32, %s3049_s7  ;;  %v827_v32 = vpop.permute.xlu1 %826 }
 0x1d1   : > { %828 = vrot.lane.b32.xlu0 %v3207_v31, %s3049_s7  ;;  %v3379_v31 = vpack.i.bf16 %v3280_v47, %v3286_v48  ;;  %v821_v36 = vpop.permute.xlu1 %820 }
 0x1d9   : > { %1006 = vrot.lane.b32.xlu0 %v3195_v27, %s3048_s30 }
 0x1e1   : > { %822 = vrot.lane.b32.xlu0 %v3241_v42, %s3049_s7  ;;  %v825_v42 = vpop.permute.xlu2 %824 }
 0x1e9   : > { %2762 = vrot.lane.b32.xlu0 %v3379_v31, %s3047_s29  ;;  %v2758_v0 = vpop.permute.xlu2 %2757 }
 0x1ea   : > { %v2760_v4 = vunpack.i.h.bf16 %v2758_v0 }
 0x200   : > { %v541_v10 = vpop.xlane.xlu0 %540 }
 0x201   : > { %v551_v47 = vsub.f32 %v526_v1, %v541_v10  ;;  %v2759_v1 = vunpack.i.l.bf16 %v2758_v0 }
 0x203   : > { %v555_v48 = vmul.f32 1.442695, %v551_v47  ;;  %797 = vmatpush.msrb.mxu0 %v2759_v1 }
 0x205   : > { %2847 = vpow2.f32 %v555_v48  ;;  %798 = vmatpush.msrb.mxu0 %v2760_v4 }
 0x208   : > { %v544_v12 = vpop.xlane.xlu0 %543 }
 0x209   : > { %v552_v50 = vsub.f32 %v3321_v3, %v544_v12 }
 0x20b   : > { %v557_v54 = vmul.f32 1.442695, %v552_v50  ;;  %v3397_v56 = vpop.eup %2847 }
 0x20c   : > { %v563_v62 = vsel %vm538_vm2, %v3397_v56, 0.0 }
 0x20d   : > { %2849 = vpow2.f32 %v557_v54 }
 0x210   : > { %v547_v49 = vpop.xlane.xlu1 %546 }
 0x211   : > { %v553_v58 = vsub.f32 %v3325_v5, %v547_v49 }
 0x213   : > { %v559_v2 = vmul.f32 1.442695, %v553_v58  ;;  %v2850_v5 = vpop.eup %2849 }
 0x215   : > { %2851 = vpow2.f32 %v559_v2 }
 0x218   : > { %v550_v59 = vpop.xlane.xlu1 %549 }
 0x219   : > { %v554_v61 = vsub.f32 %v3329_v7, %v550_v59  ;;  %v566_v7 = vsel %vm538_vm2, %v2850_v5, 0.0 }
 0x21b   : > { %v3355_v14 = vpop.permute.xlu0 %1020  ;;  %v561_v3 = vmul.f32 1.442695, %v554_v61 }
 0x21d   : > { %2853 = vpow2.f32 %v561_v3 }
 0x223   : > { %v837_v16 = vpop.permute.xlu0 %836 }
 0x224   : > { %2609 = vmatpush.xpose.msk.msrb.mxu1 %vm472_vm1, %v837_v16 }
 0x22b   : > { %v835_v17 = vpop.permute.xlu0 %834 }
 0x22c   : > { %2610 = vmatpush.xpose.msk.msrb.mxu1 %vm472_vm1, %v835_v17  ;;  %v2852_v17 = vpop.eup %2851 }
 0x230   : > { %2611 = vmatpush.xpose.msk.msrb.mxu1 %vm472_vm1, %v833_v19  ;;  %v3409_v19 = vpop.eup %2853 }
 0x233   : > { %v3364_v20 = vpop.permute.xlu0 %630 }
 0x23b   : > { %v831_v22 = vpop.permute.xlu0 %830 }
 0x23c   : > { %2612 = vmatpush.xpose.msk.msrb.mxu1 %vm472_vm1, %v831_v22 }
 0x243   : > { %v829_v27 = vpop.permute.xlu0 %828 }
 0x244   : > { %2613 = vmatpush.xpose.msk.msrb.mxu1 %vm472_vm1, %v829_v27  ;;  %v569_v27 = vsel %vm538_vm2, %v2852_v17, 0.0 }
 0x248   : > { %2614 = vmatpush.xpose.msk.msrb.mxu1 %vm472_vm1, %v827_v32 }
 0x24b   : > { %2615 = vmatmul.msk.f32.vlgmr.msrb.gmra.mxu1 %vm472_vm1, %v819_v33  ;;  %v3388_v34 = vpop.permute.xlu0 %1006  ;;  %v572_v33 = vsel %vm538_vm2, %v3409_v19, 0.0 }
 0x253   : > { %2616 = vmatmul.msk.f32.gmra.mxu1 %vm472_vm1, %v821_v36  ;;  %v823_v40 = vpop.permute.xlu0 %822  ;;  %v2766_v36 = vpack.i.bf16 %v3265_v45, %v3274_v46  ;;  %v3439_v45 = vpop.permute.xlu1 %1010 }
 0x25b   : > { %2617 = vmatmul.msk.f32.gmra.mxu1 %vm472_vm1, %v823_v40  ;;  %v2763_v10 = vpop.permute.xlu0 %2762  ;;  %v3430_v40 = vpack.i.bf16 %v3249_v43, %v3256_v44 }
 0x25c   : > { %v2764_v12 = vunpack.i.l.bf16 %v2763_v10  ;;  %v2765_v16 = vunpack.i.h.bf16 %v2763_v10 }
 0x25e   : > { %799 = vmatpush.msrb.mxu0 %v2764_v12 }
 0x260   : > { %800 = vmatpush.msrb.mxu0 %v2765_v16 }
 0x263   : > { %2618 = vmatmul.msk.f32.gmra.mxu1 %vm472_vm1, %v825_v42 }
 0x2c8   : > { %v883_v51 = vpop.f32.mrf.mxu1 }
 0x2c9   : > { %v895_v53 = vsel %vm538_vm2, %v883_v51, -inf }
 0x2ca   : > { %896 = vmax.xlane.f32.xlu2 %v895_v53 }
 0x2d0   : > { %v3400_v60 = vpop.f32.mrf.mxu1 }
 0x2d1   : > { %v898_v63 = vsel %vm538_vm2, %v3400_v60, -inf }
 0x2d2   : > { %564 = vadd.xlane.f32.xlu2 %v563_v62  ;;  %899 = vmax.xlane.f32.xlu1 %v898_v63 }
 0x2d8   : > { %v889_v6 = vpop.f32.mrf.mxu1 }
 0x2d9   : > { %v901_v8 = vsel %vm538_vm2, %v889_v6, -inf }
 0x2da   : > { %567 = vadd.xlane.f32.xlu2 %v566_v7  ;;  %902 = vmax.xlane.f32.xlu1 %v901_v8 }
 0x2e0   : > { %v3411_v22 = vpop.f32.mrf.mxu1 }
 0x2e1   : > { %v904_v32 = vsel %vm538_vm2, %v3411_v22, -inf }
 0x2e2   : > { %570 = vadd.xlane.f32.xlu2 %v569_v27  ;;  %905 = vmax.xlane.f32.xlu0 %v904_v32 }
 0x2e3   : > { %573 = vadd.xlane.f32.xlu1 %v572_v33 }
 0x2f6   : > { %2777 = vrot.lane.b32.xlu0 %v3375_v30, %s3048_s30 }
 0x2fa   : > { %2782 = vrot.lane.b32.xlu2 %v3375_v30, %s3049_s7 }
 0x2fc   : > { %2767 = vrot.lane.b32.xlu1 %v2766_v36, %s3047_s29 }
 0x2fe   : > { %2787 = vrot.lane.b32.xlu0 %v3379_v31, %s3048_s30 }
 0x302   : > { %2797 = vrot.lane.b32.xlu2 %v2766_v36, %s3048_s30 }
 0x304   : > { %2772 = vrot.lane.b32.xlu1 %v3430_v40, %s3047_s29 }
 0x306   : > { %2792 = vrot.lane.b32.xlu0 %v3379_v31, %s3049_s7 }
 0x30c   : > { %2807 = vrot.lane.b32.xlu1 %v3430_v40, %s3048_s30 }
 0x30e   : > { %2802 = vrot.lane.b32.xlu0 %v2766_v36, %s3049_s7 }
 0x33d   : > { %v897_v46 = vpop.xlane.xlu2 %896 }
 0x33e   : > { %v907_v30 = vsub.f32 %v883_v51, %v897_v46 }
 0x340   : > { %v911_v42 = vmul.f32 1.442695, %v907_v30 }
 0x342   : > { %2855 = vpow2.f32 %v911_v42 }
 0x345   : > { %v565_v47 = vpop.xlane.xlu2 %564  ;;  %v3441_v43 = vpop.xlane.xlu1 %899 }
 0x346   : > { %2857 = vrcp.f32 %v565_v47 }
 0x348   : > { %v3443_v44 = vpop.eup %2855 }
 0x349   : > { %v919_v31 = vsel %vm538_vm2, %v3443_v44, 0.0 }
 0x34a   : > { %920 = vadd.xlane.f32.xlu1 %v919_v31 }
 0x34c   : > { %v2858_v48 = vpop.eup %2857 }
 0x34d   : > { %v568_v49 = vpop.xlane.xlu2 %567  ;;  %v903_v50 = vpop.xlane.xlu1 %902  ;;  %v579_v53 = vmul.f32 %v2858_v48, %v3397_v56 }
 0x34e   : > { %2859 = vrcp.f32 %v568_v49  ;;  %v909_v54 = vsub.f32 %v889_v6, %v903_v50 }
 0x34f   : > { %2587 = vmatmul.msk.f32.vlgmr.msrb.gmra.mxu3 %vm538_vm2, %v579_v53 }
 0x350   : > { %v915_v51 = vmul.f32 1.442695, %v909_v54  ;;  %2623 = vmatpush.xpose.msk.msrb.mxu3 %vm472_vm1, %v3351_v11 }
 0x352   : > { %2861 = vpow2.f32 %v915_v51 }
 0x354   : > { %v2860_v58 = vpop.eup %2859  ;;  %2624 = vmatpush.xpose.msk.msrb.mxu3 %vm472_vm1, %v3308_v57 }
 0x355   : > { %v571_v59 = vpop.xlane.xlu2 %570  ;;  %v580_v61 = vmul.f32 %v2860_v58, %v2850_v5  ;;  %v3463_v2 = vpop.xlane.xlu0 %905 }
 0x356   : > { %2863 = vrcp.f32 %v571_v59  ;;  %v574_v56 = vpop.xlane.xlu1 %573 }
 0x357   : > { %2588 = vmatmul.msk.f32.gmra.mxu3 %vm538_vm2, %v580_v61  ;;  %2865 = vrcp.f32 %v574_v56 }
 0x358   : > { %v3454_v62 = vpop.eup %2861  ;;  %2625 = vmatpush.xpose.msk.msrb.mxu3 %vm472_vm1, %v3349_v9 }
 0x359   : > { %v925_v63 = vsel %vm538_vm2, %v3454_v62, 0.0 }
 0x35a   : > { %926 = vadd.xlane.f32.xlu2 %v925_v63 }
 0x35c   : > { %v2864_v11 = vpop.eup %2863  ;;  %2626 = vmatpush.xpose.msk.msrb.mxu3 %vm472_vm1, %v3355_v14 }
 0x35d   : > { %v2783_v57 = vpop.permute.xlu2 %2782  ;;  %v581_v0 = vmul.f32 %v2864_v11, %v2852_v17  ;;  %v2866_v3 = vpop.eup %2865 }
 0x35e   : > { %v2784_v1 = vunpack.i.l.bf16 %v2783_v57  ;;  %v2785_v9 = vunpack.i.h.bf16 %v2783_v57  ;;  %v582_v4 = vmul.f32 %v2866_v3, %v3409_v19 }
 0x35f   : > { %2589 = vmatmul.msk.f32.gmra.mxu3 %vm538_vm2, %v581_v0 }
 0x360   : > { %2627 = vmatpush.xpose.msk.msrb.mxu3 %vm472_vm1, %v3357_v15  ;;  %983 = vmatpush.msrb.mxu2 %v2784_v1 }
 0x362   : > { %984 = vmatpush.msrb.mxu2 %v2785_v9 }
 0x364   : > { %2628 = vmatpush.xpose.msk.msrb.mxu3 %vm472_vm1, %v3360_v18 }
 0x367   : > { %2590 = vmatmul.msk.f32.gmra.mxu3 %vm538_vm2, %v582_v4 }
 0x368   : > { %2629 = vmatpush.xpose.msk.msrb.mxu3 %vm472_vm1, %v3366_v21  ;;  %v2778_v14 = vpop.permute.xlu0 %2777 }
 0x369   : > { %v2779_v10 = vunpack.i.l.bf16 %v2778_v14  ;;  %v2780_v16 = vunpack.i.h.bf16 %v2778_v14 }
 0x36c   : > { %2630 = vmatpush.xpose.msk.msrb.mxu3 %vm472_vm1, %v3369_v23 }
 0x36e   : > { %v2768_v5 = vpop.permute.xlu1 %2767 }
 0x36f   : > { %2599 = vmatmul.msk.f32.vlgmr.msra.gmra.mxu3 %vm472_vm1, %v3297_v52  ;;  %v2769_v15 = vunpack.i.l.bf16 %v2768_v5  ;;  %v2770_v6 = vunpack.i.h.bf16 %v2768_v5 }
 0x370   : > { %2734 = vmatpush.xpose.msk.msra.mxu3 %vm472_vm1, %v3203_v29  ;;  %v2788_v18 = vpop.permute.xlu0 %2787 }
 0x371   : > { %801 = vmatpush.msrb.mxu0 %v2769_v15  ;;  %v2789_v17 = vunpack.i.l.bf16 %v2788_v18  ;;  %v2790_v19 = vunpack.i.h.bf16 %v2788_v18 }
 0x373   : > { %802 = vmatpush.msrb.mxu0 %v2770_v6 }
 0x374   : > { %2736 = vmatpush.xpose.msk.msra.mxu3 %vm472_vm1, %v3200_v28 }
 0x376   : > { %v2773_v21 = vpop.permute.xlu1 %2772 }
 0x377   : > { %2600 = vmatmul.msk.f32.gmra.mxu3 %vm472_vm1, %v3306_v55  ;;  %v2774_v23 = vunpack.i.l.bf16 %v2773_v21  ;;  %v2775_v7 = vunpack.i.h.bf16 %v2773_v21  ;;  %v2798_v55 = vpop.permute.xlu2 %2797 }
 0x378   : > { %2738 = vmatpush.xpose.msk.msra.mxu3 %vm472_vm1, %v3193_v26  ;;  %v2793_v52 = vpop.permute.xlu0 %2792  ;;  %v2799_v33 = vunpack.i.l.bf16 %v2798_v55  ;;  %v2800_v30 = vunpack.i.h.bf16 %v2798_v55 }
 0x379   : > { %803 = vmatpush.msrb.mxu0 %v2774_v23  ;;  %v2794_v8 = vunpack.i.l.bf16 %v2793_v52  ;;  %v2795_v12 = vunpack.i.h.bf16 %v2793_v52 }
 0x37b   : > { %804 = vmatpush.msrb.mxu0 %v2775_v7  ;;  %985 = vmatpush.msrb.mxu2 %v2794_v8 }
 0x37c   : > { %2740 = vmatpush.xpose.msk.msra.mxu3 %vm472_vm1, %v3186_v24 }
 0x37d   : > { %1169 = vmatpush.msra.mxu0 %v2779_v10  ;;  %986 = vmatpush.msrb.mxu2 %v2795_v12 }
 0x37e   : > { %v2808_v36 = vpop.permute.xlu1 %2807 }
 0x37f   : > { %1170 = vmatpush.msra.mxu0 %v2780_v16  ;;  %2601 = vmatmul.msk.f32.gmra.mxu3 %vm472_vm1, %v3353_v13  ;;  %v2809_v42 = vunpack.i.l.bf16 %v2808_v36  ;;  %v2810_v47 = vunpack.i.h.bf16 %v2808_v36 }
 0x380   : > { %v2803_v27 = vpop.permute.xlu0 %2802 }
 0x381   : > { %1171 = vmatpush.msra.mxu0 %v2789_v17  ;;  %v2804_v32 = vunpack.i.l.bf16 %v2803_v27  ;;  %v2805_v46 = vunpack.i.h.bf16 %v2803_v27 }
 0x383   : > { %1172 = vmatpush.msra.mxu0 %v2790_v19  ;;  %987 = vmatpush.msrb.mxu2 %v2804_v32 }
 0x385   : > { %1173 = vmatpush.msra.mxu0 %v2799_v33  ;;  %988 = vmatpush.msrb.mxu2 %v2805_v46 }
 0x387   : > { %1174 = vmatpush.msra.mxu0 %v2800_v30  ;;  %2602 = vmatmul.msk.f32.gmra.mxu3 %vm472_vm1, %v3364_v20 }
 0x389   : > { %1175 = vmatpush.msra.mxu0 %v2809_v42 }
 0x38b   : > { %1176 = vmatpush.msra.mxu0 %v2810_v47 }
 0x38f   : > { %2631 = vmatmul.msk.f32.vlgmr.msrb.gmra.mxu3 %vm472_vm1, %v3371_v25  ;;  %v3509_v25 = vpop.f32.mrf.mxu0 }
 0x397   : > { %2632 = vmatmul.msk.f32.gmra.mxu3 %vm472_vm1, %v3388_v34  ;;  %v3515_v50 = vpop.f32.mrf.mxu0 }
 0x39f   : > { %2633 = vmatmul.msk.f32.gmra.mxu3 %vm472_vm1, %v3391_v38  ;;  %v3521_v54 = vpop.f32.mrf.mxu0 }
 0x3a7   : > { %2634 = vmatmul.msk.f32.gmra.mxu3 %vm472_vm1, %v3439_v45  ;;  %v3529_v59 = vpop.f32.mrf.mxu0 }
 0x3af   : > { %v3533_v56 = vpop.f32.mrf.mxu0 }
 0x3b7   : > { %v3539_v11 = vpop.f32.mrf.mxu0 }
 0x3bd   : > { %v921_v6 = vpop.xlane.xlu1 %920 }
 0x3bf   : > { %v3545_v0 = vpop.f32.mrf.mxu0 }
 0x3c0   : > { %2649 = vmatmul.msk.f32.vlgmr.msra.gmra.mxu3 %vm472_vm1, %v3545_v0 }
 0x3c7   : > { %v3551_v1 = vpop.f32.mrf.mxu0 }
 0x3c8   : > { %2650 = vmatmul.msk.f32.gmra.mxu3 %vm472_vm1, %v3551_v1 }
 0x3cd   : > { %v3602_v52 = vpop.xlane.xlu2 %926 }
 0x3d2   : > { %v3499_v13 = vpop.f32.mrf.mxu3 }
 0x3d3   : > { %4437 = vst [vmem:[#allocation2_spill] sm:$0xff] %v3499_v13 }
 0x3da   : > { %v3501_v31 = vpop.f32.mrf.mxu3 }
 0x3db   : > { %4438 = vst [vmem:[#allocation3_spill] sm:$0xff] %v3501_v31 }
 0x3e2   : > { %v3503_v20 = vpop.f32.mrf.mxu3 }
 0x3e3   : > { %4439 = vst [vmem:[#allocation4_spill] sm:$0xff] %v3503_v20 }
 0x3ea   : > { %v3505_v48 = vpop.f32.mrf.mxu3 }
 0x3eb   : > { %4440 = vst [vmem:[#allocation5_spill] sm:$0xff] %v3505_v48 }
 0x3f2   : > { %v3507_v49 = vpop.f32.mrf.mxu3 }
 0x3f3   : > { %v701_v34 = vsel %vm538_vm2, %v3507_v49, -inf }
 0x3f4   : > { %702 = vmax.xlane.f32.xlu0 %v701_v34 }
 0x3fa   : > { %v3513_v38 = vpop.f32.mrf.mxu3 }
 0x3fb   : > { %v704_v45 = vsel %vm538_vm2, %v3513_v38, -inf }
 0x3fc   : > { %705 = vmax.xlane.f32.xlu1 %v704_v45 }
 0x402   : > { %v3519_v53 = vpop.f32.mrf.mxu3 }
 0x403   : > { %v707_v51 = vsel %vm538_vm2, %v3519_v53, -inf }
 0x404   : > { %708 = vmax.xlane.f32.xlu2 %v707_v51 }
 0x408   : > { %2812 = vrot.lane.b32.xlu0 %v3430_v40, %s3049_s7  ;;  %v908_v40 = vsub.f32 %v3400_v60, %v3441_v43  ;;  %v910_v43 = vsub.f32 %v3411_v22, %v3463_v2 }
 0x40a   : > { %v3527_v58 = vpop.f32.mrf.mxu3  ;;  %v913_v57 = vmul.f32 1.442695, %v908_v40  ;;  %v917_v3 = vmul.f32 1.442695, %v910_v43 }
 0x40b   : > { %v710_v4 = vsel %vm538_vm2, %v3527_v58, -inf }
 0x40c   : > { %2867 = vpow2.f32 %v913_v57 }
 0x40d   : > { %2869 = vpow2.f32 %v917_v3 }
 0x40e   : > { %2871 = vrcp.f32 %v921_v6 }
 0x412   : > { %v3531_v61 = vpop.f32.mrf.mxu3  ;;  %v3557_v60 = vpop.eup %2867 }
 0x413   : > { %v1081_v63 = vsel %vm538_vm2, %v3531_v61, -inf  ;;  %v922_v9 = vsel %vm538_vm2, %v3557_v60, 0.0  ;;  %v3573_v22 = vpop.eup %2869 }
 0x414   : > { %1082 = vmax.xlane.f32.xlu1 %v1081_v63  ;;  %v928_v2 = vsel %vm538_vm2, %v3573_v22, 0.0  ;;  %v2872_v19 = vpop.eup %2871 }
 0x415   : > { %v935_v47 = vmul.f32 %v2872_v19, %v3443_v44 }
 0x41a   : > { %v3577_v14 = vpop.f32.mrf.mxu3 }
 0x41b   : > { %v1084_v5 = vsel %vm538_vm2, %v3577_v14, -inf }
 0x41c   : > { %1504 = vrot.lane.b32.xlu2 %v3203_v29, %s3047_s29 }
 0x422   : > { %v3589_v15 = vpop.f32.mrf.mxu3 }
 0x423   : > { %v1087_v18 = vsel %vm538_vm2, %v3589_v15, -inf }
 0x424   : > { %1498 = vrot.lane.b32.xlu2 %v3186_v24, %s3047_s29 }
 0x42a   : > { %v3608_v17 = vpop.f32.mrf.mxu3 }
 0x42b   : > { %v1090_v46 = vsel %vm538_vm2, %v3608_v17, -inf }
 0x42c   : > { %1484 = vrot.lane.b32.xlu2 %v3515_v50, %s3047_s29 }
 0x42d   : > { %1500 = vrot.lane.b32.xlu1 %v3193_v26, %s3047_s29 }
 0x432   : > { %923 = vadd.xlane.f32.xlu0 %v922_v9 }
 0x434   : > { %1490 = vrot.lane.b32.xlu2 %v3533_v56, %s3047_s29 }
 0x435   : > { %1486 = vrot.lane.b32.xlu1 %v3521_v54, %s3047_s29 }
 0x43a   : > { %711 = vmax.xlane.f32.xlu0 %v710_v4 }
 0x43c   : > { %1762 = vrot.lane.b32.xlu2 %v3203_v29, %s3049_s7 }
 0x43d   : > { %1492 = vrot.lane.b32.xlu1 %v3539_v11, %s3047_s29 }
 0x442   : > { %929 = vadd.xlane.f32.xlu0 %v928_v2 }
 0x444   : > { %2014 = vrot.lane.b32.xlu2 %v3200_v28, %s3048_s30 }
 0x445   : > { %2016 = vrot.lane.b32.xlu1 %v3203_v29, %s3048_s30 }
 0x44a   : > { %1085 = vmax.xlane.f32.xlu0 %v1084_v5 }
 0x44c   : > { %2012 = vrot.lane.b32.xlu2 %v3193_v26, %s3048_s30 }
 0x44d   : > { %1496 = vrot.lane.b32.xlu1 %v3551_v1, %s3047_s29 }
 0x452   : > { %1088 = vmax.xlane.f32.xlu0 %v1087_v18 }
 0x454   : > { %1740 = vrot.lane.b32.xlu2 %v3509_v25, %s3049_s7 }
 0x455   : > { %1756 = vrot.lane.b32.xlu1 %v3186_v24, %s3049_s7 }
 0x466   : > { %1502 = vrot.lane.b32.xlu0 %v3200_v28, %s3047_s29 }
 0x467   : > { %v703_v21 = vpop.xlane.xlu0 %702 }
 0x468   : > { %v713_v23 = vsub.f32 %v3507_v49, %v703_v21 }
 0x46a   : > { %v717_v7 = vmul.f32 1.442695, %v713_v23 }
 0x46c   : > { %2873 = vpow2.f32 %v717_v7 }
 0x46e   : > { %1482 = vrot.lane.b32.xlu0 %v3509_v25, %s3047_s29 }
 0x46f   : > { %v706_v8 = vpop.xlane.xlu1 %705 }
 0x470   : > { %v714_v10 = vsub.f32 %v3513_v38, %v706_v8 }
 0x472   : > { %v719_v55 = vmul.f32 1.442695, %v714_v10  ;;  %v3610_v33 = vpop.eup %2873 }
 0x473   : > { %v725_v42 = vsel %vm538_vm2, %v3610_v33, 0.0 }
 0x476   : > { %1488 = vrot.lane.b32.xlu0 %v3529_v59, %s3047_s29 }
 0x477   : > { %v709_v12 = vpop.xlane.xlu2 %708 }
 0x478   : > { %v715_v16 = vsub.f32 %v3519_v53, %v709_v12 }
 0x47a   : > { %v721_v27 = vmul.f32 1.442695, %v715_v16  ;;  %v2813_v32 = vpop.permute.xlu0 %2812 }
 0x47b   : > { %v2814_v36 = vunpack.i.l.bf16 %v2813_v32  ;;  %v2815_v30 = vunpack.i.h.bf16 %v2813_v32 }
 0x47c   : > { %2875 = vpow2.f32 %v721_v27 }
 0x47d   : > { %2877 = vpow2.f32 %v719_v55  ;;  %989 = vmatpush.msrb.mxu2 %v2814_v36  ;;  %1091 = vmax.xlane.f32.xlu2 %v1090_v46 }
 0x47e   : > { %1494 = vrot.lane.b32.xlu0 %v3545_v0, %s3047_s29 }
 0x47f   : > { %990 = vmatpush.msrb.mxu2 %v2815_v30  ;;  %v1505_v49 = vpop.permute.xlu2 %1504  ;;  %726 = vadd.xlane.f32.xlu1 %v725_v42 }
 0x480   : > { %2619 = vmatmul.msk.f32.vlgmr.msrb.gmra.mxu2 %vm538_vm2, %v935_v47  ;;  %2659 = vmatpush.xpose.msk.msrb.mxu3 %vm472_vm1, %v1505_v49 }
 0x481   : > { %2733 = vmatpush.xpose.msk.msra.mxu2 %vm472_vm1, %v3203_v29 }
 0x482   : > { %v3623_v34 = vpop.eup %2875 }
 0x483   : > { %v3625_v38 = vpop.eup %2877  ;;  %v731_v45 = vsel %vm538_vm2, %v3623_v34, 0.0 }
 0x484   : > { %v728_v44 = vsel %vm538_vm2, %v3625_v38, 0.0 }
 0x485   : > { %2735 = vmatpush.xpose.msk.msra.mxu2 %vm472_vm1, %v3200_v28  ;;  %732 = vadd.xlane.f32.xlu2 %v731_v45 }
 0x486   : > { %1760 = vrot.lane.b32.xlu0 %v3200_v28, %s3049_s7 }
 0x487   : > { %v3635_v53 = vpop.permute.xlu2 %1498  ;;  %v1083_v51 = vpop.xlane.xlu1 %1082  ;;  %729 = vadd.xlane.f32.xlu1 %v728_v44 }
 0x488   : > { %v1093_v63 = vsub.f32 %v3531_v61, %v1083_v51 }
 0x489   : > { %2737 = vmatpush.xpose.msk.msra.mxu2 %vm472_vm1, %v3193_v26 }
 0x48a   : > { %v1097_v40 = vmul.f32 1.442695, %v1093_v63 }
 0x48c   : > { %2879 = vpow2.f32 %v1097_v40 }
 0x48d   : > { %2739 = vmatpush.xpose.msk.msra.mxu2 %vm472_vm1, %v3186_v24 }
 0x48e   : > { %1758 = vrot.lane.b32.xlu0 %v3193_v26, %s3049_s7 }
 0x48f   : > { %v3645_v57 = vpop.permute.xlu2 %1484 }
 0x491   : > { %1453 = vmatpush.msrb.mxu2 %v3238_v41 }
 0x492   : > { %v3648_v43 = vpop.eup %2879 }
 0x493   : > { %1454 = vmatpush.msrb.mxu2 %v3232_v39  ;;  %v1105_v61 = vsel %vm538_vm2, %v3648_v43, 0.0 }
 0x494   : > { %1106 = vadd.xlane.f32.xlu1 %v1105_v61 }
 0x495   : > { %1455 = vmatpush.msrb.mxu2 %v3226_v37 }
 0x496   : > { %2010 = vrot.lane.b32.xlu0 %v3186_v24, %s3048_s30 }
 0x497   : > { %1456 = vmatpush.msrb.mxu2 %v3220_v35  ;;  %v3656_v9 = vpop.permute.xlu2 %1490 }
 0x49e   : > { %1742 = vrot.lane.b32.xlu0 %v3515_v50, %s3049_s7 }
 0x49f   : > { %v1763_v3 = vpop.permute.xlu2 %1762 }
 0x4a0   : > { %2679 = vmatpush.xpose.msk.msra.mxu1 %vm472_vm1, %v1763_v3 }
 0x4a5   : > { %v924_v4 = vpop.xlane.xlu0 %923 }
 0x4a6   : > { %2881 = vrcp.f32 %v924_v4  ;;  %1998 = vrot.lane.b32.xlu0 %v3521_v54, %s3048_s30 }
 0x4a7   : > { %2883 = vrcp.f32 %v3602_v52 }
 0x4ac   : > { %v2882_v2 = vpop.eup %2881 }
 0x4ad   : > { %v712_v5 = vpop.xlane.xlu0 %711  ;;  %1994 = vrot.lane.b32.xlu1 %v3509_v25, %s3048_s30  ;;  %v936_v18 = vmul.f32 %v2882_v2, %v3557_v60  ;;  %v2884_v23 = vpop.eup %2883 }
 0x4ae   : > { %v716_v6 = vsub.f32 %v3527_v58, %v712_v5  ;;  %1748 = vrot.lane.b32.xlu0 %v3533_v56, %s3049_s7  ;;  %v937_v8 = vmul.f32 %v2884_v23, %v3454_v62  ;;  %v1501_v58 = vpop.permute.xlu1 %1500 }
 0x4af   : > { %2620 = vmatmul.msk.f32.gmra.mxu2 %vm538_vm2, %v936_v18 }
 0x4b0   : > { %v723_v21 = vmul.f32 1.442695, %v716_v6 }
 0x4b2   : > { %2885 = vpow2.f32 %v723_v21 }
 0x4b5   : > { %v930_v7 = vpop.xlane.xlu0 %929 }
 0x4b6   : > { %2887 = vrcp.f32 %v930_v7  ;;  %2004 = vrot.lane.b32.xlu0 %v3539_v11, %s3048_s30  ;;  %v1487_v62 = vpop.permute.xlu1 %1486 }
 0x4b7   : > { %2621 = vmatmul.msk.f32.gmra.mxu2 %vm538_vm2, %v937_v8 }
 0x4b8   : > { %v3675_v60 = vpop.eup %2885 }
 0x4b9   : > { %v734_v52 = vsel %vm538_vm2, %v3675_v60, 0.0 }
 0x4ba   : > { %735 = vadd.xlane.f32.xlu2 %v734_v52 }
 0x4bc   : > { %v2888_v10 = vpop.eup %2887 }
 0x4bd   : > { %v1086_v12 = vpop.xlane.xlu0 %1085  ;;  %v938_v16 = vmul.f32 %v2888_v10, %v3573_v22 }
 0x4be   : > { %1754 = vrot.lane.b32.xlu0 %v3551_v1, %s3049_s7  ;;  %v3686_v32 = vpop.permute.xlu1 %1492  ;;  %v1094_v45 = vsub.f32 %v3577_v14, %v1086_v12 }
 0x4bf   : > { %2622 = vmatmul.msk.f32.gmra.mxu2 %vm538_vm2, %v938_v16 }
 0x4c5   : > { %v1089_v55 = vpop.xlane.xlu0 %1088 }
 0x4c6   : > { %v1095_v19 = vsub.f32 %v3589_v15, %v1089_v55  ;;  %v2017_v36 = vpop.permute.xlu1 %2016  ;;  %v2015_v15 = vpop.permute.xlu2 %2014 }
 0x4c7   : > { %2644 = vmatmul.msk.f32.vlgmr.msra.gmra.mxu2 %vm472_vm1, %v3515_v50  ;;  %v3777_v55 = vpop.f32.mrf.mxu3 }
 0x4c8   : > { %v1101_v27 = vmul.f32 1.442695, %v1095_v19 }
 0x4ca   : > { %2889 = vpow2.f32 %v1101_v27 }
 0x4ce   : > { %v2013_v47 = vpop.permute.xlu2 %2012 }
 0x4cf   : > { %2645 = vmatmul.msk.f32.gmra.mxu2 %vm472_vm1, %v3521_v54  ;;  %v3783_v27 = vpop.f32.mrf.mxu3 }
 0x4d0   : > { %v3692_v22 = vpop.eup %2889 }
 0x4d1   : > { %v1111_v46 = vsel %vm538_vm2, %v3692_v22, 0.0 }
 0x4d2   : > { %1996 = vrot.lane.b32.xlu2 %v3515_v50, %s3048_s30  ;;  %v1497_v50 = vpop.permute.xlu1 %1496 }
 0x4d6   : > { %v1741_v51 = vpop.permute.xlu2 %1740 }
 0x4d7   : > { %2646 = vmatmul.msk.f32.gmra.mxu2 %vm472_vm1, %v3529_v59  ;;  %1112 = vadd.xlane.f32.xlu1 %v1111_v46 }
 0x4d8   : > { %v1503_v30 = vpop.permute.xlu0 %1502 }
 0x4d9   : > { %2660 = vmatpush.xpose.msk.msrb.mxu3 %vm472_vm1, %v1503_v30 }
 0x4da   : > { %v1757_v44 = vpop.permute.xlu1 %1756 }
 0x4dd   : > { %2661 = vmatpush.xpose.msk.msrb.mxu3 %vm472_vm1, %v1501_v58 }
 0x4df   : > { %2647 = vmatmul.msk.f32.gmra.mxu2 %vm472_vm1, %v3533_v56 }
 0x4e0   : > { %v1483_v42 = vpop.permute.xlu0 %1482 }
 0x4e1   : > { %2662 = vmatpush.xpose.msk.msrb.mxu3 %vm472_vm1, %v3635_v53  ;;  %v1099_v53 = vmul.f32 1.442695, %v1094_v45 }
 0x4e3   : > { %2891 = vpow2.f32 %v1099_v53 }
 0x4e4   : > { %2663 = vmatmul.msk.f32.vlgmr.msrb.gmra.mxu3 %vm472_vm1, %v1483_v42 }
 0x4e5   : > { %2699 = vmatpush.xpose.msk.msra.mxu3 %vm472_vm1, %v2017_v36 }
 0x4e7   : > { %2648 = vmatmul.msk.f32.gmra.mxu2 %vm472_vm1, %v3539_v11 }
 0x4e8   : > { %v1489_v49 = vpop.permute.xlu0 %1488 }
 0x4e9   : > { %2700 = vmatpush.xpose.msk.msra.mxu3 %vm472_vm1, %v2015_v15  ;;  %v3716_v3 = vpop.eup %2891 }
 0x4ea   : > { %v1108_v2 = vsel %vm538_vm2, %v3716_v3, 0.0 }
 0x4ec   : > { %2664 = vmatmul.msk.f32.gmra.mxu3 %vm472_vm1, %v3645_v57 }
 0x4ed   : > { %2701 = vmatpush.xpose.msk.msra.mxu3 %vm472_vm1, %v2013_v47 }
 0x4f0   : > { %v1495_v63 = vpop.permute.xlu0 %1494  ;;  %1744 = vrot.lane.b32.xlu1 %v3521_v54, %s3049_s7  ;;  %v1092_v61 = vpop.xlane.xlu2 %1091 }
 0x4f2   : > { %v727_v40 = vpop.xlane.xlu1 %726 }
 0x4f3   : > { %2893 = vrcp.f32 %v727_v40 }
 0x4f4   : > { %2665 = vmatmul.msk.f32.gmra.mxu3 %vm472_vm1, %v1487_v62 }
 0x4f8   : > { %v1761_v14 = vpop.permute.xlu0 %1760  ;;  %2000 = vrot.lane.b32.xlu1 %v3529_v59, %s3048_s30  ;;  %v733_v5 = vpop.xlane.xlu2 %732 }
 0x4f9   : > { %v2894_v4 = vpop.eup %2893  ;;  %2680 = vmatpush.xpose.msk.msra.mxu1 %vm472_vm1, %v1761_v14 }
 0x4fa   : > { %v730_v57 = vpop.xlane.xlu1 %729  ;;  %v741_v54 = vmul.f32 %v2894_v4, %v3610_v33 }
 0x4fb   : > { %2895 = vrcp.f32 %v730_v57  ;;  %1109 = vadd.xlane.f32.xlu2 %v1108_v2 }
 0x4fc   : > { %2603 = vmatmul.msk.f32.vlgmr.msrb.gmra.mxu0 %vm538_vm2, %v741_v54  ;;  %2666 = vmatmul.msk.f32.gmra.mxu3 %vm472_vm1, %v1489_v49  ;;  %2897 = vrcp.f32 %v733_v5 }
 0x4fd   : > { %2639 = vmatpush.xpose.msk.msrb.mxu0 %vm472_vm1, %v3203_v29 }
 0x500   : > { %v1759_v18 = vpop.permute.xlu0 %1758  ;;  %1750 = vrot.lane.b32.xlu1 %v3539_v11, %s3049_s7 }
 0x501   : > { %v2896_v6 = vpop.eup %2895  ;;  %2640 = vmatpush.xpose.msk.msrb.mxu0 %vm472_vm1, %v3200_v28  ;;  %2681 = vmatpush.xpose.msk.msra.mxu1 %vm472_vm1, %v1759_v18 }
 0x502   : > { %v742_v33 = vmul.f32 %v2896_v6, %v3625_v38  ;;  %v2898_v29 = vpop.eup %2897  ;;  %v1347_v6 = vsel %vm268_vm0, %v3777_v55, -inf }
 0x503   : > { %v743_v28 = vmul.f32 %v2898_v29, %v3623_v34  ;;  %v1096_v34 = vsub.f32 %v3608_v17, %v1092_v61 }
 0x504   : > { %2604 = vmatmul.msk.f32.gmra.mxu0 %vm538_vm2, %v742_v33  ;;  %2667 = vmatmul.msk.f32.gmra.mxu3 %vm472_vm1, %v3656_v9 }
 0x505   : > { %2641 = vmatpush.xpose.msk.msrb.mxu0 %vm472_vm1, %v3193_v26  ;;  %2682 = vmatpush.xpose.msk.msra.mxu1 %vm472_vm1, %v1757_v44  ;;  %v1103_v21 = vmul.f32 1.442695, %v1096_v34 }
 0x507   : > { %v1107_v38 = vpop.xlane.xlu1 %1106 }
 0x508   : > { %v2011_v11 = vpop.permute.xlu0 %2010  ;;  %2006 = vrot.lane.b32.xlu1 %v3545_v0, %s3048_s30  ;;  %2683 = vmatmul.msk.f32.vlgmr.msra.gmra.mxu1 %vm472_vm1, %v1741_v51 }
 0x509   : > { %2642 = vmatpush.xpose.msk.msrb.mxu0 %vm472_vm1, %v3186_v24  ;;  %2702 = vmatpush.xpose.msk.msra.mxu3 %vm472_vm1, %v2011_v11  ;;  %v1350_v11 = vsel %vm268_vm0, %v3783_v27, -inf }
 0x50c   : > { %2605 = vmatmul.msk.f32.gmra.mxu0 %vm538_vm2, %v743_v28  ;;  %2668 = vmatmul.msk.f32.gmra.mxu3 %vm472_vm1, %v3686_v32 }
 0x510   : > { %v1743_v26 = vpop.permute.xlu0 %1742 }
 0x511   : > { %2684 = vmatmul.msk.f32.gmra.mxu1 %vm472_vm1, %v1743_v26 }
 0x513   : > { %1746 = vrot.lane.b32.xlu2 %v3529_v59, %s3049_s7  ;;  %v3759_v59 = vpop.f32.mrf.mxu2 }
 0x514   : > { %2669 = vmatmul.msk.f32.gmra.mxu3 %vm472_vm1, %v1495_v63 }
 0x518   : > { %v1999_v12 = vpop.permute.xlu0 %1998 }
 0x51c   : > { %2670 = vmatmul.msk.f32.gmra.mxu3 %vm472_vm1, %v1497_v50 }
 0x51f   : > { %v1995_v24 = vpop.permute.xlu1 %1994 }
 0x520   : > { %v1749_v40 = vpop.permute.xlu0 %1748 }
 0x524   : > { %2703 = vmatmul.msk.f32.vlgmr.msra.gmra.mxu3 %vm472_vm1, %v1995_v24 }
 0x52d   : > { %v736_v9 = vpop.xlane.xlu2 %735 }
 0x52e   : > { %2899 = vrcp.f32 %v736_v9 }
 0x52f   : > { %2901 = vpow2.f32 %v1103_v21  ;;  %v3852_v21 = vpack.i.bf16 %v3232_v39, %v3238_v41  ;;  %v2005_v41 = vpop.permute.xlu0 %2004 }
 0x530   : > { %2903 = vrcp.f32 %v1107_v38 }
 0x532   : > { %v3768_v16 = vpop.f32.mrf.mxu2 }
 0x534   : > { %v2900_v23 = vpop.eup %2899 }
 0x535   : > { %v1997_v7 = vpop.permute.xlu2 %1996  ;;  %v744_v8 = vmul.f32 %v2900_v23, %v3675_v60  ;;  %v3762_v58 = vpop.eup %2901 }
 0x536   : > { %2704 = vmatmul.msk.f32.gmra.mxu3 %vm472_vm1, %v1997_v7  ;;  %v2904_v52 = vpop.eup %2903  ;;  %v1114_v17 = vsel %vm538_vm2, %v3762_v58, 0.0  ;;  %v3860_v7 = vpack.i.bf16 %v3220_v35, %v3226_v37 }
 0x537   : > { %2606 = vmatmul.msk.f32.gmra.mxu0 %vm538_vm2, %v744_v8  ;;  %v1121_v10 = vmul.f32 %v2904_v52, %v3648_v43  ;;  %v1755_v35 = vpop.permute.xlu0 %1754 }
 0x53a   : > { %v3771_v60 = vpop.f32.mrf.mxu2 }
 0x53c   : > { %1115 = vadd.xlane.f32.xlu2 %v1114_v17 }
 0x53e   : > { %2705 = vmatmul.msk.f32.gmra.mxu3 %vm472_vm1, %v1999_v12 }
 0x53f   : > { %2635 = vmatmul.msk.f32.vlgmr.msra.gmra.mxu0 %vm538_vm2, %v1121_v10 }
 0x542   : > { %v3773_v62 = vpop.f32.mrf.mxu2 }
 0x54a   : > { %v1113_v19 = vpop.xlane.xlu1 %1112  ;;  %v3781_v43 = vpop.f32.mrf.mxu2 }
 0x54b   : > { %v1332_v5 = vsel %vm268_vm0, %v3781_v43, -inf }
 0x552   : > { %v3788_v36 = vpop.f32.mrf.mxu2 }
 0x553   : > { %v1335_v50 = vsel %vm268_vm0, %v3788_v36, -inf }
 0x554   : > { %2002 = vrot.lane.b32.xlu2 %v3533_v56, %s3048_s30 }
 0x55a   : > { %v3801_v42 = vpop.f32.mrf.mxu2 }
 0x55b   : > { %v1338_v51 = vsel %vm268_vm0, %v3801_v42, -inf }
 0x55c   : > { %1752 = vrot.lane.b32.xlu2 %v3545_v0, %s3049_s7 }
 0x562   : > { %v1745_v32 = vpop.permute.xlu1 %1744  ;;  %v3810_v63 = vpop.f32.mrf.mxu2 }
 0x563   : > { %2685 = vmatmul.msk.f32.gmra.mxu1 %vm472_vm1, %v1745_v32  ;;  %v1341_v28 = vsel %vm268_vm0, %v3810_v63, -inf }
 0x564   : > { %2008 = vrot.lane.b32.xlu2 %v3551_v1, %s3048_s30 }
 0x567   : > { %v3790_v46 = vpop.f32.mrf.mxu3 }
 0x568   : > { %v1571_v56 = vsel %vm268_vm0, %v3790_v46, -inf }
 0x569   : > { %1572 = vmax.xlane.f32.xlu0 %v1571_v56 }
 0x56a   : > { %v2001_v15 = vpop.permute.xlu1 %2000  ;;  %v3819_v4 = vpop.f32.mrf.mxu2 }
 0x56b   : > { %2706 = vmatmul.msk.f32.gmra.mxu3 %vm472_vm1, %v2001_v15 }
 0x56e   : > { %v1110_v0 = vpop.xlane.xlu2 %1109 }
 0x56f   : > { %2905 = vrcp.f32 %v1110_v0  ;;  %v3795_v30 = vpop.f32.mrf.mxu3 }
 0x570   : > { %v1574_v1 = vsel %vm268_vm0, %v3795_v30, -inf  ;;  %2907 = vrcp.f32 %v1113_v19 }
 0x571   : > { %1336 = vmax.xlane.f32.xlu0 %v1335_v50  ;;  %1575 = vmax.xlane.f32.xlu1 %v1574_v1 }
 0x572   : > { %v1751_v57 = vpop.permute.xlu1 %1750 }
 0x575   : > { %v2906_v47 = vpop.eup %2905 }
 0x576   : > { %v1747_v49 = vpop.permute.xlu2 %1746  ;;  %v1122_v45 = vmul.f32 %v2906_v47, %v3716_v3  ;;  %v2908_v53 = vpop.eup %2907 }
 0x577   : > { %v3804_v44 = vpop.f32.mrf.mxu3  ;;  %2686 = vmatmul.msk.f32.gmra.mxu1 %vm472_vm1, %v1747_v49  ;;  %v1123_v61 = vmul.f32 %v2908_v53, %v3692_v22  ;;  %v1344_v22 = vsel %vm268_vm0, %v3819_v4, -inf }
 0x578   : > { %2636 = vmatmul.msk.f32.gmra.mxu0 %vm538_vm2, %v1122_v45  ;;  %v1577_v33 = vsel %vm268_vm0, %v3804_v44, -inf }
 0x579   : > { %1339 = vmax.xlane.f32.xlu1 %v1338_v51  ;;  %v3896_v53 = vpop.f32.mrf.mxu0 }
 0x57a   : > { %v2007_v37 = vpop.permute.xlu1 %2006 }
 0x57f   : > { %v3813_v14 = vpop.f32.mrf.mxu3  ;;  %2687 = vmatmul.msk.f32.gmra.mxu1 %vm472_vm1, %v1749_v40 }
 0x580   : > { %2637 = vmatmul.msk.f32.gmra.mxu0 %vm538_vm2, %v1123_v61  ;;  %v1580_v3 = vsel %vm268_vm0, %v3813_v14, -inf }
 0x581   : > { %1581 = vmax.xlane.f32.xlu0 %v1580_v3 }
 0x585   : > { %v3854_v23 = vpop.f32.mrf.mxu1 }
 0x586   : > { %v1829_v8 = vsel %vm268_vm0, %v3854_v23, -inf }
 0x587   : > { %v3821_v2 = vpop.f32.mrf.mxu3  ;;  %2688 = vmatmul.msk.f32.gmra.mxu1 %vm472_vm1, %v1751_v57 }
 0x588   : > { %v1583_v54 = vsel %vm268_vm0, %v3821_v2, -inf }
 0x589   : > { %1345 = vmax.xlane.f32.xlu0 %v1344_v22  ;;  %1584 = vmax.xlane.f32.xlu1 %v1583_v54 }
 0x58d   : > { %1333 = vmax.xlane.f32.xlu2 %v1332_v5  ;;  %v3908_v5 = vpop.f32.mrf.mxu0 }
 0x58e   : > { %v3879_v0 = vpop.f32.mrf.mxu1 }
 0x58f   : > { %v3830_v18 = vpop.f32.mrf.mxu3  ;;  %v1832_v51 = vsel %vm268_vm0, %v3879_v0, -inf }
 0x590   : > { %v1586_v24 = vsel %vm268_vm0, %v3830_v18, -inf }
 0x591   : > { %1348 = vmax.xlane.f32.xlu1 %v1347_v6 }
 0x595   : > { %1578 = vmax.xlane.f32.xlu2 %v1577_v33 }
 0x597   : > { %v3836_v29 = vpop.f32.mrf.mxu3 }
 0x598   : > { %v1589_v34 = vsel %vm268_vm0, %v3836_v29, -inf }
 0x599   : > { %1351 = vmax.xlane.f32.xlu1 %v1350_v11 }
 0x59d   : > { %1342 = vmax.xlane.f32.xlu2 %v1341_v28 }
 0x59f   : > { %v3842_v26 = vpop.f32.mrf.mxu3 }
 0x5a0   : > { %v1592_v38 = vsel %vm268_vm0, %v3842_v26, -inf }
 0x5a1   : > { %1593 = vmax.xlane.f32.xlu0 %v1592_v38 }
 0x5a5   : > { %1587 = vmax.xlane.f32.xlu2 %v1586_v24 }
 0x5a7   : > { %v3877_v56 = vpop.f32.mrf.mxu3 }
 0x5ad   : > { %1590 = vmax.xlane.f32.xlu2 %v1589_v34 }
 0x5af   : > { %v1116_v9 = vpop.xlane.xlu2 %1115 }
 0x5b0   : > { %2909 = vrcp.f32 %v1116_v9 }
 0x5b2   : > { %2817 = vrot.lane.b32.xlu1 %v3852_v21, %s3047_s29 }
 0x5b5   : > { %1830 = vmax.xlane.f32.xlu2 %v1829_v8  ;;  %2822 = vrot.lane.b32.xlu0 %v3860_v7, %s3047_s29 }
 0x5b6   : > { %v2910_v52 = vpop.eup %2909 }
 0x5b7   : > { %v2003_v17 = vpop.permute.xlu2 %2002  ;;  %v1124_v39 = vmul.f32 %v2910_v52, %v3762_v58 }
 0x5b8   : > { %2707 = vmatmul.msk.f32.gmra.mxu3 %vm472_vm1, %v2003_v17 }
 0x5b9   : > { %2638 = vmatmul.msk.f32.gmra.mxu0 %vm538_vm2, %v1124_v39  ;;  %v3886_v49 = vpop.f32.mrf.mxu3  ;;  %v3915_v39 = vpop.f32.mrf.mxu0 }
 0x5bf   : > { %v1753_v10 = vpop.permute.xlu2 %1752 }
 0x5c0   : > { %2689 = vmatmul.msk.f32.gmra.mxu1 %vm472_vm1, %v1753_v10  ;;  %2708 = vmatmul.msk.f32.gmra.mxu3 %vm472_vm1, %v2005_v41 }
 0x5c1   : > { %2643 = vmatmul.msk.f32.vlgmr.msrb.gmra.mxu0 %vm472_vm1, %v3509_v25  ;;  %v3898_v40 = vpop.f32.mrf.mxu3 }
 0x5c7   : > { %v2009_v58 = vpop.permute.xlu2 %2008 }
 0x5c8   : > { %2690 = vmatmul.msk.f32.gmra.mxu1 %vm472_vm1, %v1755_v35  ;;  %2709 = vmatmul.msk.f32.gmra.mxu3 %vm472_vm1, %v2007_v37 }
 0x5d0   : > { %2710 = vmatmul.msk.f32.gmra.mxu3 %vm472_vm1, %v2009_v58 }
 0x5dc   : > { %v1573_v12 = vpop.xlane.xlu0 %1572 }
 0x5dd   : > { %v1595_v19 = vsub.f32 %v3790_v46, %v1573_v12 }
 0x5df   : > { %v1603_v32 = vmul.f32 1.442695, %v1595_v19  ;;  %v3928_v19 = vpop.f32.mrf.mxu0 }
 0x5e0   : > { %v3888_v46 = vpop.f32.mrf.mxu1 }
 0x5e1   : > { %2911 = vpow2.f32 %v1603_v32 }
 0x5e4   : > { %v1576_v15 = vpop.xlane.xlu1 %1575  ;;  %v1337_v6 = vpop.xlane.xlu0 %1336 }
 0x5e5   : > { %v1596_v25 = vsub.f32 %v3795_v30, %v1576_v15  ;;  %v1355_v38 = vsub.f32 %v3788_v36, %v1337_v6 }
 0x5e7   : > { %v3882_v50 = vpop.eup %2911  ;;  %v1605_v1 = vmul.f32 1.442695, %v1596_v25  ;;  %v1365_v8 = vmul.f32 1.442695, %v1355_v38 }
 0x5e8   : > { %v1619_v47 = vsel %vm268_vm0, %v3882_v50, 0.0 }
 0x5e9   : > { %1620 = vadd.xlane.f32.xlu0 %v1619_v47  ;;  %2913 = vpow2.f32 %v1605_v1 }
 0x5ec   : > { %v1340_v61 = vpop.xlane.xlu1 %1339 }
 0x5ed   : > { %v1356_v32 = vsub.f32 %v3801_v42, %v1340_v61 }
 0x5ee   : > { %v3904_v22 = vpop.f32.mrf.mxu3 }
 0x5ef   : > { %v3890_v45 = vpop.eup %2913  ;;  %v2092_v11 = vsel %vm268_vm0, %v3904_v22, -inf  ;;  %v1367_v15 = vmul.f32 1.442695, %v1356_v32 }
 0x5f0   : > { %v1622_v30 = vsel %vm268_vm0, %v3890_v45, 0.0 }
 0x5f1   : > { %1833 = vmax.xlane.f32.xlu0 %v1832_v51  ;;  %1623 = vadd.xlane.f32.xlu2 %v1622_v30  ;;  %v3935_v51 = vpop.f32.mrf.mxu0 }
 0x5f4   : > { %v3900_v3 = vpop.f32.mrf.mxu1  ;;  %v1582_v36 = vpop.xlane.xlu0 %1581 }
 0x5f5   : > { %v1838_v57 = vsel %vm268_vm0, %v3900_v3, -inf }
 0x5f9   : > { %1839 = vmax.xlane.f32.xlu0 %v1838_v57 }
 0x5fc   : > { %v3906_v54 = vpop.xlane.xlu1 %1584  ;;  %v1346_v25 = vpop.xlane.xlu0 %1345 }
 0x600   : > { %v1334_v33 = vpop.xlane.xlu2 %1333 }
 0x601   : > { %v1354_v28 = vsub.f32 %v3781_v43, %v1334_v33  ;;  %2093 = vmax.xlane.f32.xlu0 %v2092_v11 }
 0x603   : > { %v1363_v24 = vmul.f32 1.442695, %v1354_v28  ;;  %v3946_v28 = vpop.f32.mrf.mxu0 }
 0x604   : > { %v1349_v34 = vpop.xlane.xlu1 %1348 }
 0x605   : > { %2915 = vpow2.f32 %v1363_v24  ;;  %v1359_v9 = vsub.f32 %v3777_v55, %v1349_v34 }
 0x607   : > { %v1373_v52 = vmul.f32 1.442695, %v1359_v9 }
 0x608   : > { %v1579_v17 = vpop.xlane.xlu2 %1578 }
 0x609   : > { %2917 = vpow2.f32 %v1373_v52  ;;  %v1597_v10 = vsub.f32 %v3804_v44, %v1579_v17 }
 0x60a   : > { %2919 = vpow2.f32 %v1365_v8 }
 0x60b   : > { %v3917_v41 = vpop.eup %2915  ;;  %v1607_v35 = vmul.f32 1.442695, %v1597_v10  ;;  %v1598_v10 = vsub.f32 %v3813_v14, %v1582_v36 }
 0x60c   : > { %v1380_v43 = vsel %vm268_vm0, %v3917_v41, 0.0  ;;  %v3937_v30 = vpop.xlane.xlu1 %1351 }
 0x60d   : > { %1381 = vadd.xlane.f32.xlu2 %v1380_v43  ;;  %2921 = vpow2.f32 %v1607_v35  ;;  %v2086_v43 = vsel %vm268_vm0, %v3886_v49, -inf  ;;  %v1609_v32 = vmul.f32 1.442695, %v1598_v10 }
 0x60e   : > { %2923 = vpow2.f32 %v1367_v15  ;;  %v1358_v15 = vsub.f32 %v3819_v4, %v1346_v25  ;;  %v2089_v4 = vsel %vm268_vm0, %v3898_v40, -inf  ;;  %v1599_v25 = vsub.f32 %v3821_v2, %v3906_v54 }
 0x60f   : > { %v3922_v37 = vpop.eup %2917 }
 0x610   : > { %v1343_v55 = vpop.xlane.xlu2 %1342  ;;  %v3924_v58 = vpop.eup %2919  ;;  %v1395_v12 = vsel %vm268_vm0, %v3922_v37, 0.0 }
 0x611   : > { %1396 = vadd.xlane.f32.xlu0 %v1395_v12  ;;  %v1383_v44 = vsel %vm268_vm0, %v3924_v58, 0.0  ;;  %v3957_v12 = vpop.f32.mrf.mxu0 }
 0x613   : > { %v3933_v47 = vpop.eup %2921 }
 0x614   : > { %v1625_v57 = vsel %vm268_vm0, %v3933_v47, 0.0  ;;  %v3941_v42 = vpop.xlane.xlu0 %1593  ;;  %v3943_v6 = vpop.eup %2923 }
 0x615   : > { %1384 = vadd.xlane.f32.xlu2 %v1383_v44  ;;  %v1386_v24 = vsel %vm268_vm0, %v3943_v6, 0.0  ;;  %v1835_v44 = vsel %vm268_vm0, %v3888_v46, -inf }
 0x618   : > { %v1588_v1 = vpop.xlane.xlu2 %1587 }
 0x61d   : > { %1626 = vadd.xlane.f32.xlu2 %v1625_v57 }
 0x620   : > { %v1591_v61 = vpop.xlane.xlu2 %1590 }
 0x621   : > { %v1601_v33 = vsub.f32 %v3836_v29, %v1591_v61  ;;  %v1357_v61 = vsub.f32 %v3810_v63, %v1343_v55  ;;  %v2083_v55 = vsel %vm268_vm0, %v3877_v56, -inf }
 0x623   : > { %v1615_v11 = vmul.f32 1.442695, %v1601_v33 }
 0x624   : > { %v2818_v38 = vpop.permute.xlu1 %2817 }
 0x625   : > { %2925 = vpow2.f32 %v1615_v11  ;;  %v2819_v34 = vunpack.i.l.bf16 %v2818_v38  ;;  %1387 = vadd.xlane.f32.xlu2 %v1386_v24  ;;  %v2820_v9 = vunpack.i.h.bf16 %v2818_v38  ;;  %v1371_v11 = vmul.f32 1.442695, %v1358_v15 }
 0x626   : > { %2927 = vpow2.f32 %v1609_v32  ;;  %v1369_v24 = vmul.f32 1.442695, %v1357_v61 }
 0x627   : > { %v2823_v8 = vpop.permute.xlu0 %2822  ;;  %1711 = vmatpush.msra.mxu0 %v2819_v34  ;;  %2929 = vpow2.f32 %v1371_v11  ;;  %v1600_v34 = vsub.f32 %v3830_v18, %v1588_v1  ;;  %v3986_v1 = vpop.f32.mrf.mxu1  ;;  %v1360_v11 = vsub.f32 %v3783_v27, %v3937_v30  ;;  %v1602_v27 = vsub.f32 %v3842_v26, %v3941_v42 }
 0x628   : > { %v2824_v52 = vunpack.i.l.bf16 %v2823_v8  ;;  %v2825_v29 = vunpack.i.h.bf16 %v2823_v8  ;;  %2931 = vpow2.f32 %v1369_v24  ;;  %v1611_v8 = vmul.f32 1.442695, %v1599_v25  ;;  %v1831_v32 = vpop.xlane.xlu2 %1830 }
 0x629   : > { %1712 = vmatpush.msra.mxu0 %v2820_v9  ;;  %v1613_v63 = vmul.f32 1.442695, %v1600_v34  ;;  %v1853_v15 = vsub.f32 %v3854_v23, %v1831_v32  ;;  %v1841_v24 = vsel %vm268_vm0, %v3986_v1, -inf  ;;  %v1375_v34 = vmul.f32 1.442695, %v1360_v11 }
 0x62b   : > { %v3950_v17 = vpop.eup %2925  ;;  %1713 = vmatpush.msra.mxu0 %v2824_v52  ;;  %2933 = vpow2.f32 %v1613_v63 }
 0x62c   : > { %v1637_v35 = vsel %vm268_vm0, %v3950_v17, 0.0  ;;  %v3963_v36 = vpop.eup %2927  ;;  %2935 = vpow2.f32 %v1611_v8 }
 0x62d   : > { %2087 = vmax.xlane.f32.xlu2 %v2086_v43  ;;  %1638 = vadd.xlane.f32.xlu0 %v1637_v35  ;;  %v1628_v57 = vsel %vm268_vm0, %v3963_v36, 0.0  ;;  %v3980_v9 = vpop.eup %2929 }
 0x62e   : > { %1714 = vmatpush.msra.mxu0 %v2825_v29  ;;  %v3982_v52 = vpop.eup %2931  ;;  %v1392_v18 = vsel %vm268_vm0, %v3980_v9, 0.0 }
 0x62f   : > { %v1389_v2 = vsel %vm268_vm0, %v3982_v52, 0.0 }
 0x631   : > { %v3990_v54 = vpop.eup %2933 }
 0x632   : > { %v3992_v10 = vpop.eup %2935  ;;  %v1634_v29 = vsel %vm268_vm0, %v3990_v54, 0.0 }
 0x633   : > { %v1631_v35 = vsel %vm268_vm0, %v3992_v10, 0.0 }
 0x635   : > { %1836 = vmax.xlane.f32.xlu2 %v1835_v44  ;;  %v4000_v44 = vpop.f32.mrf.mxu1 }
 0x636   : > { %v3961_v14 = vpop.f32.mrf.mxu0  ;;  %v1844_v61 = vsel %vm268_vm0, %v4000_v44, -inf }
 0x63b   : > { %v3996_v43 = vpop.f32.mrf.mxu3 }
 0x63c   : > { %v2095_v8 = vsel %vm268_vm0, %v3996_v43, -inf }
 0x63d   : > { %1629 = vadd.xlane.f32.xlu2 %v1628_v57  ;;  %v4017_v30 = vpop.f32.mrf.mxu1 }
 0x63e   : > { %v3969_v33 = vpop.f32.mrf.mxu0 }
 0x63f   : > { %v1329_v38 = vsel %vm268_vm0, %v3969_v33, -inf }
 0x640   : > { %1330 = vmax.xlane.f32.xlu1 %v1329_v38  ;;  %v1861_v38 = vmul.f32 1.442695, %v1853_v15 }
 0x645   : > { %2090 = vmax.xlane.f32.xlu2 %v2089_v4  ;;  %v4009_v4 = vpop.f32.mrf.mxu3  ;;  %v4031_v32 = vpop.f32.mrf.mxu1 }
 0x646   : > { %v2098_v63 = vsel %vm268_vm0, %v4009_v4, -inf }
 0x648   : > { %2084 = vmax.xlane.f32.xlu1 %v2083_v55 }
 0x64d   : > { %1393 = vadd.xlane.f32.xlu2 %v1392_v18 }
 0x650   : > { %1390 = vadd.xlane.f32.xlu1 %v1389_v2 }
 0x655   : > { %1635 = vadd.xlane.f32.xlu2 %v1634_v29 }
 0x658   : > { %1632 = vadd.xlane.f32.xlu1 %v1631_v35 }
 0x65c   : > { %v1621_v57 = vpop.xlane.xlu0 %1620 }
 0x65d   : > { %2937 = vrcp.f32 %v1621_v57  ;;  %1845 = vmax.xlane.f32.xlu2 %v1844_v61  ;;  %v1850_v57 = vsel %vm268_vm0, %v4031_v32, -inf }
 0x65e   : > { %2939 = vpow2.f32 %v1861_v38 }
 0x65f   : > { %2941 = vpow2.f32 %v1375_v34 }
 0x660   : > { %1842 = vmax.xlane.f32.xlu1 %v1841_v24 }
 0x663   : > { %v2938_v25 = vpop.eup %2937 }
 0x664   : > { %v1651_v23 = vmul.f32 %v2938_v25, %v3882_v50  ;;  %v1624_v55 = vpop.xlane.xlu2 %1623  ;;  %v4021_v18 = vpop.eup %2939  ;;  %v1617_v50 = vmul.f32 1.442695, %v1602_v27 }
 0x665   : > { %2099 = vmax.xlane.f32.xlu2 %v2098_v63  ;;  %2943 = vrcp.f32 %v1624_v55  ;;  %v4023_v2 = vpop.eup %2941  ;;  %v1877_v35 = vsel %vm268_vm0, %v4021_v18, 0.0  ;;  %v4055_v27 = vpop.xlane.xlu0 %1833 }
 0x666   : > { %2671 = vmatmul.msk.f32.vlgmr.msra.gmra.mxu0 %vm268_vm0, %v1651_v23  ;;  %2945 = vpow2.f32 %v1617_v50  ;;  %v1398_v42 = vsel %vm268_vm0, %v4023_v2, 0.0 }
 0x668   : > { %2096 = vmax.xlane.f32.xlu1 %v2095_v8 }
 0x66b   : > { %v2944_v29 = vpop.eup %2943 }
 0x66c   : > { %v1652_v26 = vmul.f32 %v2944_v29, %v3890_v45  ;;  %v4033_v15 = vpop.eup %2945  ;;  %v4039_v45 = vpop.f32.mrf.mxu3 }
 0x66d   : > { %1878 = vadd.xlane.f32.xlu2 %v1877_v35  ;;  %v1640_v61 = vsel %vm268_vm0, %v4033_v15, 0.0  ;;  %v2101_v11 = vsel %vm268_vm0, %v4039_v45, -inf  ;;  %v4059_v50 = vpop.xlane.xlu0 %1839 }
 0x66e   : > { %2672 = vmatmul.msk.f32.gmra.mxu0 %vm268_vm0, %v1652_v26 }
 0x670   : > { %1399 = vadd.xlane.f32.xlu1 %v1398_v42 }
 0x675   : > { %1851 = vmax.xlane.f32.xlu2 %v1850_v57  ;;  %v2094_v42 = vpop.xlane.xlu0 %2093 }
 0x678   : > { %1641 = vadd.xlane.f32.xlu1 %v1640_v61 }
 0x680   : > { %v4043_v38 = vpop.xlane.xlu2 %1381  ;;  %2102 = vmax.xlane.f32.xlu1 %v2101_v11 }
 0x688   : > { %v4045_v24 = vpop.xlane.xlu2 %1384 }
 0x690   : > { %v1627_v34 = vpop.xlane.xlu2 %1626 }
 0x691   : > { %2947 = vrcp.f32 %v1627_v34  ;;  %v2110_v34 = vsub.f32 %v3904_v22, %v2094_v42 }
 0x693   : > { %v2121_v48 = vmul.f32 1.442695, %v2110_v34  ;;  %v4090_v34 = vpop.xlane.xlu0 %1396 }
 0x697   : > { %v2948_v25 = vpop.eup %2947 }
 0x698   : > { %v4047_v23 = vpop.xlane.xlu2 %1387  ;;  %v1653_v63 = vmul.f32 %v2948_v25, %v3933_v47 }
 0x699   : > { %2832 = vrot.lane.b32.xlu1 %v3860_v7, %s3049_s7 }
 0x69a   : > { %2673 = vmatmul.msk.f32.gmra.mxu0 %vm268_vm0, %v1653_v63 }
 0x6a0   : > { %v4053_v55 = vpop.xlane.xlu2 %2087 }
 0x6a8   : > { %v4057_v8 = vpop.xlane.xlu2 %1836 }
 0x6b0   : > { %v1630_v29 = vpop.xlane.xlu2 %1629 }
 0x6b1   : > { %2949 = vrcp.f32 %v1630_v29 }
 0x6b3   : > { %v1331_v35 = vpop.xlane.xlu1 %1330 }
 0x6b4   : > { %v1353_v26 = vsub.f32 %v3969_v33, %v1331_v35  ;;  %v4070_v33 = vpop.f32.mrf.mxu3 }
 0x6b5   : > { %v2104_v22 = vsel %vm268_vm0, %v4070_v33, -inf }
 0x6b6   : > { %v1361_v47 = vmul.f32 1.442695, %v1353_v26 }
 0x6b7   : > { %v2950_v57 = vpop.eup %2949 }
 0x6b8   : > { %2951 = vpow2.f32 %v1361_v47  ;;  %v4062_v61 = vpop.xlane.xlu2 %2090  ;;  %v1654_v11 = vmul.f32 %v2950_v57, %v3963_v36  ;;  %v1847_v47 = vsel %vm268_vm0, %v4017_v30, -inf }
 0x6ba   : > { %2674 = vmatmul.msk.f32.gmra.mxu0 %vm268_vm0, %v1654_v11 }
 0x6bb   : > { %v2085_v25 = vpop.xlane.xlu1 %2084 }
 0x6bc   : > { %v2107_v63 = vsub.f32 %v3877_v56, %v2085_v25 }
 0x6be   : > { %v4068_v29 = vpop.eup %2951  ;;  %v2115_v20 = vmul.f32 1.442695, %v2107_v63 }
 0x6bf   : > { %v1377_v35 = vsel %vm268_vm0, %v4068_v29, 0.0 }
 0x6c0   : > { %2953 = vpow2.f32 %v2115_v20  ;;  %v4074_v26 = vpop.xlane.xlu2 %1393  ;;  %1378 = vadd.xlane.f32.xlu0 %v1377_v35 }
 0x6c1   : > { %2955 = vpow2.f32 %v2121_v48 }
 0x6c3   : > { %2105 = vmax.xlane.f32.xlu1 %v2104_v22  ;;  %v4078_v36 = vpop.xlane.xlu1 %1390 }
 0x6c6   : > { %v4080_v56 = vpop.eup %2953 }
 0x6c7   : > { %v4082_v42 = vpop.eup %2955  ;;  %v2131_v20 = vsel %vm268_vm0, %v4080_v56, 0.0 }
 0x6c8   : > { %4441 = vst [vmem:[#allocation6_spill] sm:$0xff] %v4082_v42  ;;  %v1636_v57 = vpop.xlane.xlu2 %1635  ;;  %1848 = vmax.xlane.f32.xlu0 %v1847_v47  ;;  %2132 = vadd.xlane.f32.xlu2 %v2131_v20  ;;  %v2140_v48 = vsel %vm268_vm0, %v4082_v42, 0.0  ;;  %v1639_v47 = vpop.xlane.xlu0 %1638 }
 0x6cb   : > { %2141 = vadd.xlane.f32.xlu1 %v2140_v48  ;;  %v1633_v11 = vpop.xlane.xlu1 %1632 }
 0x6cc   : > { %2957 = vrcp.f32 %v1633_v11 }
 0x6cd   : > { %2959 = vrcp.f32 %v1636_v57 }
 0x6ce   : > { %2961 = vrcp.f32 %v1639_v47 }
 0x6d0   : > { %v4092_v25 = vpop.xlane.xlu2 %1845 }
 0x6d2   : > { %v2958_v63 = vpop.eup %2957 }
 0x6d3   : > { %v4094_v35 = vpop.xlane.xlu1 %1842  ;;  %v1655_v22 = vmul.f32 %v2958_v63, %v3992_v10  ;;  %v2960_v20 = vpop.eup %2959 }
 0x6d4   : > { %v1656_v48 = vmul.f32 %v2960_v20, %v3990_v54  ;;  %v2962_v10 = vpop.eup %2961 }
 0x6d5   : > { %2675 = vmatmul.msk.f32.gmra.mxu0 %vm268_vm0, %v1655_v22 }
 0x6d8   : > { %v2100_v31 = vpop.xlane.xlu2 %2099 }
 0x6d9   : > { %v2112_v57 = vsub.f32 %v4009_v4, %v2100_v31 }
 0x6db   : > { %v2097_v13 = vpop.xlane.xlu1 %2096  ;;  %v2125_v22 = vmul.f32 1.442695, %v2112_v57 }
 0x6dc   : > { %v2111_v11 = vsub.f32 %v3996_v43, %v2097_v13  ;;  %2827 = vrot.lane.b32.xlu0 %v3852_v21, %s3049_s7  ;;  %v1657_v13 = vmul.f32 %v2962_v10, %v3950_v17 }
 0x6dd   : > { %2676 = vmatmul.msk.f32.gmra.mxu0 %vm268_vm0, %v1656_v48 }
 0x6de   : > { %v2123_v42 = vmul.f32 1.442695, %v2111_v11 }
 0x6e0   : > { %2963 = vpow2.f32 %v2123_v42  ;;  %v4104_v63 = vpop.xlane.xlu2 %1878  ;;  %2837 = vrot.lane.b32.xlu2 %v3852_v21, %s3048_s30 }
 0x6e1   : > { %2965 = vpow2.f32 %v2125_v22  ;;  %v1855_v22 = vsub.f32 %v3888_v46, %v4057_v8  ;;  %v1856_v46 = vsub.f32 %v3900_v3, %v4059_v50  ;;  %v1857_v3 = vsub.f32 %v3986_v1, %v4094_v35 }
 0x6e3   : > { %v4108_v47 = vpop.xlane.xlu1 %1399  ;;  %v1867_v8 = vmul.f32 1.442695, %v1856_v46 }
 0x6e5   : > { %2677 = vmatmul.msk.f32.gmra.mxu0 %vm268_vm0, %v1657_v13  ;;  %v2108_v13 = vsub.f32 %v3886_v49, %v4053_v55 }
 0x6e6   : > { %v4112_v54 = vpop.eup %2963 }
 0x6e7   : > { %v2143_v31 = vsel %vm268_vm0, %v4112_v54, 0.0  ;;  %v4119_v20 = vpop.eup %2965 }
 0x6e8   : > { %v1852_v43 = vpop.xlane.xlu2 %1851  ;;  %2842 = vrot.lane.b32.xlu2 %v3860_v7, %s3048_s30  ;;  %2144 = vadd.xlane.f32.xlu1 %v2143_v31  ;;  %v2146_v17 = vsel %vm268_vm0, %v4119_v20, 0.0  ;;  %v1854_v7 = vsub.f32 %v3879_v0, %v4055_v27  ;;  %v2109_v0 = vsub.f32 %v3898_v40, %v4062_v61 }
 0x6e9   : > { %v1860_v21 = vsub.f32 %v4031_v32, %v1852_v43  ;;  %v2117_v43 = vmul.f32 1.442695, %v2108_v13 }
 0x6ea   : > { %v1863_v10 = vmul.f32 1.442695, %v1854_v7 }
 0x6eb   : > { %v1875_v4 = vmul.f32 1.442695, %v1860_v21  ;;  %v1642_v42 = vpop.xlane.xlu1 %1641  ;;  %v2119_v21 = vmul.f32 1.442695, %v2109_v0 }
 0x6ec   : > { %2967 = vrcp.f32 %v1642_v42  ;;  %v1869_v42 = vmul.f32 1.442695, %v1857_v3 }
 0x6ed   : > { %2969 = vpow2.f32 %v1875_v4 }
 0x6ee   : > { %2971 = vpow2.f32 %v1863_v10 }
 0x6f0   : > { %2147 = vadd.xlane.f32.xlu1 %v2146_v17 }
 0x6f2   : > { %v2968_v48 = vpop.eup %2967 }
 0x6f3   : > { %v1658_v11 = vmul.f32 %v2968_v48, %v4033_v15  ;;  %v4124_v57 = vpop.eup %2969  ;;  %v1865_v15 = vmul.f32 1.442695, %v1855_v22  ;;  %v2103_v35 = vpop.xlane.xlu1 %2102 }
 0x6f4   : > { %v1898_v32 = vsel %vm268_vm0, %v4124_v57, 0.0  ;;  %v4135_v31 = vpop.eup %2971 }
 0x6f5   : > { %2678 = vmatmul.msk.f32.gmra.mxu0 %vm268_vm0, %v1658_v11  ;;  %2973 = vpow2.f32 %v1865_v15  ;;  %v1880_v27 = vsel %vm268_vm0, %v4135_v31, 0.0 }
 0x6f6   : > { %2975 = vpow2.f32 %v2117_v43 }
 0x6f7   : > { %2977 = vpow2.f32 %v2119_v21 }
 0x6f8   : > { %1899 = vadd.xlane.f32.xlu1 %v1898_v32  ;;  %2979 = vpow2.f32 %v1867_v8 }
 0x6f9   : > { %2981 = vpow2.f32 %v1869_v42 }
 0x6fb   : > { %v4141_v4 = vpop.eup %2973 }
 0x6fc   : > { %v4145_v49 = vpop.eup %2975  ;;  %v1883_v55 = vsel %vm268_vm0, %v4141_v4, 0.0 }
 0x6fd   : > { %v2134_v40 = vsel %vm268_vm0, %v4145_v49, 0.0  ;;  %v4153_v61 = vpop.eup %2977 }
 0x6fe   : > { %v2137_v50 = vsel %vm268_vm0, %v4153_v61, 0.0  ;;  %v4161_v17 = vpop.eup %2979 }
 0x6ff   : > { %v1886_v48 = vsel %vm268_vm0, %v4161_v17, 0.0  ;;  %v4169_v11 = vpop.eup %2981 }
 0x700   : > { %v1889_v7 = vsel %vm268_vm0, %v4169_v11, 0.0 }
 0x706   : > { %1881 = vadd.xlane.f32.xlu0 %v1880_v27 }
 0x70b   : > { %v2833_v10 = vpop.permute.xlu1 %2832 }
 0x70e   : > { %1884 = vadd.xlane.f32.xlu0 %v1883_v55 }
 0x711   : > { %2135 = vadd.xlane.f32.xlu2 %v2134_v40  ;;  %1210 = vrot.lane.b32.xlu1 %v3759_v59, %s3050_s8  ;;  %v1858_v59 = vsub.f32 %v4000_v44, %v4092_v25 }
 0x713   : > { %v1871_v1 = vmul.f32 1.442695, %v1858_v59 }
 0x715   : > { %2983 = vpow2.f32 %v1871_v1 }
 0x716   : > { %2138 = vadd.xlane.f32.xlu0 %v2137_v50 }
 0x719   : > { %1228 = vrot.lane.b32.xlu1 %v3946_v28, %s3051_s9  ;;  %v2113_v28 = vsub.f32 %v4039_v45, %v2103_v35 }
 0x71b   : > { %v2127_v44 = vmul.f32 1.442695, %v2113_v28  ;;  %v4176_v25 = vpop.eup %2983 }
 0x71c   : > { %v1892_v32 = vsel %vm268_vm0, %v4176_v25, 0.0 }
 0x71d   : > { %2985 = vpow2.f32 %v2127_v44 }
 0x71e   : > { %1887 = vadd.xlane.f32.xlu0 %v1886_v48 }
 0x721   : > { %1230 = vrot.lane.b32.xlu1 %v3957_v12, %s3051_s9 }
 0x723   : > { %v4180_v12 = vpop.eup %2985 }
 0x724   : > { %v2149_v45 = vsel %vm268_vm0, %v4180_v12, 0.0 }
 0x726   : > { %1890 = vadd.xlane.f32.xlu0 %v1889_v7 }
 0x729   : > { %1232 = vrot.lane.b32.xlu1 %v3961_v14, %s3051_s9 }
 0x72e   : > { %1893 = vadd.xlane.f32.xlu0 %v1892_v32  ;;  %v2835_v32 = vunpack.i.h.bf16 %v2833_v10 }
 0x733   : > { %v1379_v22 = vpop.xlane.xlu0 %1378 }
 0x734   : > { %2987 = vrcp.f32 %v1379_v22 }
 0x735   : > { %2989 = vrcp.f32 %v4043_v38 }
 0x736   : > { %2150 = vadd.xlane.f32.xlu0 %v2149_v45  ;;  %v2106_v14 = vpop.xlane.xlu1 %2105 }
 0x737   : > { %v2114_v21 = vsub.f32 %v4070_v33, %v2106_v14 }
 0x739   : > { %v2129_v8 = vmul.f32 1.442695, %v2114_v21 }
 0x73a   : > { %v2988_v13 = vpop.eup %2987 }
 0x73b   : > { %v1409_v15 = vmul.f32 %v2988_v13, %v4068_v29  ;;  %v1849_v43 = vpop.xlane.xlu0 %1848  ;;  %v2133_v0 = vpop.xlane.xlu2 %2132 }
 0x73c   : > { %v1859_v27 = vsub.f32 %v4017_v30, %v1849_v43  ;;  %v2990_v55 = vpop.eup %2989 }
 0x73d   : > { %2651 = vmatmul.msk.f32.vlgmr.msrb.gmra.mxu2 %vm268_vm0, %v1409_v15  ;;  %v1410_v38 = vmul.f32 %v2990_v55, %v3917_v41 }
 0x73e   : > { %v1873_v46 = vmul.f32 1.442695, %v1859_v27 }
 0x740   : > { %2991 = vpow2.f32 %v1873_v46 }
 0x741   : > { %2993 = vrcp.f32 %v4045_v24 }
 0x742   : > { %2995 = vpow2.f32 %v2129_v8 }
 0x743   : > { %v2838_v40 = vpop.permute.xlu2 %2837  ;;  %2997 = vrcp.f32 %v2133_v0  ;;  %v2142_v0 = vpop.xlane.xlu1 %2141 }
 0x744   : > { %v2839_v3 = vunpack.i.l.bf16 %v2838_v40  ;;  %v2840_v30 = vunpack.i.h.bf16 %v2838_v40  ;;  %2999 = vrcp.f32 %v4047_v23 }
 0x745   : > { %2652 = vmatmul.msk.f32.gmra.mxu2 %vm268_vm0, %v1410_v38  ;;  %3001 = vrcp.f32 %v4078_v36 }
 0x746   : > { %v4192_v29 = vpop.eup %2991  ;;  %2219 = vmatpush.msrb.mxu0 %v2839_v3  ;;  %3003 = vrcp.f32 %v4074_v26  ;;  %v4442_v3 = vld [vmem:[#allocation6_spill] sm:$0xff] }
 0x747   : > { %v1895_v33 = vsel %vm268_vm0, %v4192_v29, 0.0  ;;  %v2994_v50 = vpop.eup %2993  ;;  %3005 = vrcp.f32 %v4090_v34 }
 0x748   : > { %1896 = vadd.xlane.f32.xlu2 %v1895_v33  ;;  %2220 = vmatpush.msrb.mxu0 %v2840_v30  ;;  %v4199_v41 = vpop.eup %2995  ;;  %v1411_v42 = vmul.f32 %v2994_v50, %v3924_v58  ;;  %3007 = vrcp.f32 %v4108_v47 }
 0x749   : > { %v2998_v59 = vpop.eup %2997  ;;  %v2152_v23 = vsel %vm268_vm0, %v4199_v41, 0.0  ;;  %3009 = vrcp.f32 %v4104_v63 }
 0x74a   : > { %1194 = vrot.lane.b32.xlu0 %v3896_v53, %s3052_s10  ;;  %v2163_v28 = vmul.f32 %v2998_v59, %v4080_v56  ;;  %v3000_v44 = vpop.eup %2999  ;;  %v2834_v56 = vunpack.i.l.bf16 %v2833_v10 }
 0x74b   : > { %v2843_v24 = vpop.permute.xlu2 %2842  ;;  %v1412_v58 = vmul.f32 %v3000_v44, %v3943_v6  ;;  %v3002_v22 = vpop.eup %3001  ;;  %v2368_v44 = vld [vmem:[%s4433_s4] sm:$0xff] }
 0x74c   : > { %v2844_v48 = vunpack.i.l.bf16 %v2843_v24  ;;  %v2845_v1 = vunpack.i.h.bf16 %v2843_v24  ;;  %v1413_v36 = vmul.f32 %v3002_v22, %v3982_v52  ;;  %v1716_v6 = vpop.f32.mrf.mxu0 }
 0x74d   : > { %2653 = vmatmul.msk.f32.gmra.mxu2 %vm268_vm0, %v1411_v42 }
 0x74e   : > { %v2828_v35 = vpop.permute.xlu0 %2827  ;;  %2221 = vmatpush.msrb.mxu0 %v2844_v48  ;;  %v2371_v48 = vld [vmem:[%s4433_s4 + $0x18] sm:$0xff] }
 0x74f   : > { %v2829_v7 = vunpack.i.l.bf16 %v2828_v35  ;;  %v2830_v53 = vunpack.i.h.bf16 %v2828_v35  ;;  %2424 = vmatpush.msrb.mxu1 %v2371_v48  ;;  %v2369_v35 = vld [vmem:[%s4433_s4 + $0x8] sm:$0xff] }
 0x750   : > { %2153 = vadd.xlane.f32.xlu2 %v2152_v23  ;;  %2222 = vmatpush.msrb.mxu0 %v2845_v1 }
 0x751   : > { %1965 = vmatpush.msra.mxu2 %v2829_v7  ;;  %2711 = vmatmul.msk.f32.vlgmr.msrb.gmra.mxu0 %vm268_vm0, %v2163_v28 }
 0x752   : > { %1196 = vrot.lane.b32.xlu0 %v3908_v5, %s3052_s10  ;;  %v3004_v5 = vpop.eup %3003 }
 0x753   : > { %1966 = vmatpush.msra.mxu2 %v2830_v53  ;;  %v1414_v10 = vmul.f32 %v3004_v5, %v3980_v9  ;;  %v3006_v45 = vpop.eup %3005 }
 0x754   : > { %v1719_v52 = vpop.f32.mrf.mxu0  ;;  %v3008_v26 = vpop.eup %3007 }
 0x755   : > { %2654 = vmatmul.msk.f32.gmra.mxu2 %vm268_vm0, %v1412_v58  ;;  %v3010_v9 = vpop.eup %3009 }
 0x756   : > { %1967 = vmatpush.msra.mxu2 %v2834_v56  ;;  %v1909_v34 = vmul.f32 %v3010_v9, %v4021_v18 }
 0x758   : > { %1968 = vmatpush.msra.mxu2 %v2835_v32 }
 0x75a   : > { %1198 = vrot.lane.b32.xlu0 %v3915_v39, %s3052_s10  ;;  %v1415_v39 = vmul.f32 %v3006_v45, %v3922_v37  ;;  %v4443_v45 = vld [vmem:[#allocation2_spill] sm:$0xff] }
 0x75b   : > { %v2145_v55 = vpop.xlane.xlu1 %2144 }
 0x75d   : > { %2655 = vmatmul.msk.f32.gmra.mxu2 %vm268_vm0, %v1413_v36 }
 0x762   : > { %1200 = vrot.lane.b32.xlu0 %v3928_v19, %s3052_s10  ;;  %v1416_v19 = vmul.f32 %v3008_v26, %v4023_v2 }
 0x763   : > { %v2148_v33 = vpop.xlane.xlu1 %2147 }
 0x765   : > { %2656 = vmatmul.msk.f32.gmra.mxu2 %vm268_vm0, %v1414_v10 }
 0x768   : > { %1226 = vrot.lane.b32.xlu2 %v3935_v51, %s3051_s9  ;;  %v1722_v51 = vpop.f32.mrf.mxu0 }
 0x76a   : > { %2256 = vrot.lane.b32.xlu0 %v1716_v6, %s3052_s10 }
 0x76b   : > { %v1900_v56 = vpop.xlane.xlu1 %1899 }
 0x76d   : > { %2657 = vmatmul.msk.f32.gmra.mxu2 %vm268_vm0, %v1415_v39 }
 0x770   : > { %1212 = vrot.lane.b32.xlu2 %v3768_v16, %s3050_s8  ;;  %v1725_v16 = vpop.f32.mrf.mxu0 }
 0x772   : > { %2258 = vrot.lane.b32.xlu0 %v1719_v52, %s3052_s10 }
 0x775   : > { %2658 = vmatmul.msk.f32.gmra.mxu2 %vm268_vm0, %v1416_v19 }
 0x778   : > { %1214 = vrot.lane.b32.xlu2 %v3771_v60, %s3050_s8  ;;  %v1728_v13 = vpop.f32.mrf.mxu0 }
 0x779   : > { %v1882_v37 = vpop.xlane.xlu0 %1881 }
 0x77a   : > { %3011 = vrcp.f32 %v1882_v37  ;;  %2260 = vrot.lane.b32.xlu0 %v1722_v51, %s3052_s10 }
 0x77d   : > { %2691 = vmatmul.msk.f32.vlgmr.msra.gmra.mxu2 %vm268_vm0, %v1909_v34 }
 0x780   : > { %v3012_v63 = vpop.eup %3011  ;;  %1216 = vrot.lane.b32.xlu2 %v3773_v62, %s3050_s8 }
 0x781   : > { %v1885_v2 = vpop.xlane.xlu0 %1884  ;;  %v1910_v47 = vmul.f32 %v3012_v63, %v4135_v31  ;;  %v1731_v31 = vpop.f32.mrf.mxu0 }
 0x782   : > { %3013 = vrcp.f32 %v1885_v2  ;;  %2262 = vrot.lane.b32.xlu0 %v1725_v16, %s3052_s10  ;;  %v4444_v2 = vld [vmem:[#allocation3_spill] sm:$0xff] }
 0x783   : > { %v1211_v6 = vpop.permute.xlu1 %1210 }
 0x784   : > { %v2136_v60 = vpop.xlane.xlu2 %2135 }
 0x785   : > { %3015 = vrcp.f32 %v2136_v60  ;;  %2692 = vmatmul.msk.f32.gmra.mxu2 %vm268_vm0, %v1910_v47 }
 0x788   : > { %v3014_v14 = vpop.eup %3013 }
 0x789   : > { %v2139_v18 = vpop.xlane.xlu0 %2138  ;;  %v1911_v43 = vmul.f32 %v3014_v14, %v4141_v4 }
 0x78a   : > { %2264 = vrot.lane.b32.xlu0 %v1728_v13, %s3052_s10  ;;  %3017 = vrcp.f32 %v2139_v18 }
 0x78b   : > { %v3016_v15 = vpop.eup %3015  ;;  %v1229_v16 = vpop.permute.xlu1 %1228 }
 0x78c   : > { %v2164_v62 = vmul.f32 %v3016_v15, %v4145_v49  ;;  %v1734_v49 = vpop.f32.mrf.mxu0  ;;  %v4445_v15 = vld [vmem:[#allocation4_spill] sm:$0xff] }
 0x78d   : > { %2693 = vmatmul.msk.f32.gmra.mxu2 %vm268_vm0, %v1911_v43 }
 0x78e   : > { %2712 = vmatmul.msk.f32.gmra.mxu0 %vm268_vm0, %v2164_v62 }
 0x790   : > { %v3018_v27 = vpop.eup %3017 }
 0x791   : > { %v1888_v21 = vpop.xlane.xlu0 %1887  ;;  %v2165_v46 = vmul.f32 %v3018_v27, %v4153_v61 }
 0x792   : > { %3019 = vrcp.f32 %v1888_v21  ;;  %2266 = vrot.lane.b32.xlu0 %v1731_v31, %s3052_s10 }
 0x793   : > { %3021 = vrcp.f32 %v2142_v0  ;;  %v1231_v18 = vpop.permute.xlu1 %1230 }
 0x794   : > { %v1737_v24 = vpop.f32.mrf.mxu0 }
 0x796   : > { %2713 = vmatmul.msk.f32.gmra.mxu0 %vm268_vm0, %v2165_v46  ;;  %v4446_v46 = vld [vmem:[#allocation5_spill] sm:$0xff] }
 0x798   : > { %v3020_v4 = vpop.eup %3019 }
 0x799   : > { %v3022_v8 = vpop.eup %3021  ;;  %v1891_v40 = vpop.xlane.xlu0 %1890  ;;  %v1912_v38 = vmul.f32 %v3020_v4, %v4161_v17 }
 0x79a   : > { %3023 = vrcp.f32 %v1891_v40  ;;  %2268 = vrot.lane.b32.xlu0 %v1734_v49, %s3052_s10  ;;  %v2166_v30 = vmul.f32 %v3022_v8, %v4442_v3 }
 0x79b   : > { %3025 = vrcp.f32 %v2145_v55  ;;  %2694 = vmatmul.msk.f32.gmra.mxu2 %vm268_vm0, %v1912_v38  ;;  %v1233_v8 = vpop.permute.xlu1 %1232 }
 0x79e   : > { %2714 = vmatmul.msk.f32.gmra.mxu0 %vm268_vm0, %v2166_v30 }
 0x7a0   : > { %v3024_v61 = vpop.eup %3023 }
 0x7a1   : > { %v3026_v50 = vpop.eup %3025  ;;  %v1894_v42 = vpop.xlane.xlu0 %1893  ;;  %v1913_v59 = vmul.f32 %v3024_v61, %v4169_v11  ;;  %v2370_v11 = vld [vmem:[%s4433_s4 + $0x10] sm:$0xff] }
 0x7a2   : > { %3027 = vrcp.f32 %v1894_v42  ;;  %2270 = vrot.lane.b32.xlu0 %v1737_v24, %s3052_s10  ;;  %v2167_v17 = vmul.f32 %v3026_v50, %v4112_v54  ;;  %2425 = vmatpush.msrb.mxu1 %v2370_v11 }
 0x7a3   : > { %3029 = vrcp.f32 %v2148_v33  ;;  %2695 = vmatmul.msk.f32.gmra.mxu2 %vm268_vm0, %v1913_v59 }
 0x7a4   : > { %2426 = vmatpush.msrb.mxu1 %v2369_v35 }
 0x7a6   : > { %2715 = vmatmul.msk.f32.gmra.mxu0 %vm268_vm0, %v2167_v17  ;;  %2427 = vmatpush.msrb.mxu1 %v2368_v44 }
 0x7a8   : > { %v3028_v1 = vpop.eup %3027 }
 0x7a9   : > { %v3030_v28 = vpop.eup %3029  ;;  %v2151_v7 = vpop.xlane.xlu0 %2150  ;;  %v1914_v54 = vmul.f32 %v3028_v1, %v4176_v25 }
 0x7aa   : > { %3031 = vrcp.f32 %v2151_v7  ;;  %v2168_v23 = vmul.f32 %v3030_v28, %v4119_v20 }
 0x7ab   : > { %2696 = vmatmul.msk.f32.gmra.mxu2 %vm268_vm0, %v1914_v54  ;;  %v4338_v54 = vld [vmem:[%s4434_s5] ss:$0 sm:$0xff] }
 0x7ae   : > { %2716 = vmatmul.msk.f32.gmra.mxu0 %vm268_vm0, %v2168_v23 }
 0x7b0   : > { %v3032_v53 = vpop.eup %3031 }
 0x7b1   : > { %v2169_v58 = vmul.f32 %v3032_v53, %v4180_v12 }
 0x7b6   : > { %2717 = vmatmul.msk.f32.gmra.mxu0 %vm268_vm0, %v2169_v58 }
 0x7bb   : > { %v1897_v25 = vpop.xlane.xlu2 %1896 }
 0x7bc   : > { %3033 = vrcp.f32 %v1897_v25  ;;  %v1195_v20 = vpop.permute.xlu0 %1194 }
 0x7bd   : > { %3035 = vrcp.f32 %v1900_v56  ;;  %v1238_v12 = vsel %vm472_vm1, %v4443_v45, %v1195_v20 }
 0x7be   : > { %v1243_v19 = vsel %vm1242_vm3, %v1238_v12, %v1211_v6 }
 0x7c0   : > { %v4280_v32 = vpop.f32.mrf.mxu2 }
 0x7c2   : > { %v3034_v22 = vpop.eup %3033 }
 0x7c3   : > { %v2154_v36 = vpop.xlane.xlu2 %2153  ;;  %v1915_v5 = vmul.f32 %v3034_v22, %v4192_v29  ;;  %v3036_v10 = vpop.eup %3035 }
 0x7c4   : > { %3037 = vrcp.f32 %v2154_v36  ;;  %v1916_v51 = vmul.f32 %v3036_v10, %v4124_v57  ;;  %v1197_v9 = vpop.permute.xlu0 %1196 }
 0x7c5   : > { %2697 = vmatmul.msk.f32.gmra.mxu2 %vm268_vm0, %v1915_v5  ;;  %v1239_v57 = vsel %vm472_vm1, %v4444_v2, %v1197_v9 }
 0x7c8   : > { %v4286_v39 = vpop.f32.mrf.mxu2 }
 0x7ca   : > { %v3038_v52 = vpop.eup %3037 }
 0x7cb   : > { %v1227_v26 = vpop.permute.xlu2 %1226  ;;  %v2170_v29 = vmul.f32 %v3038_v52, %v4199_v41 }
 0x7cc   : > { %v1248_v37 = vsel %vm1247_vm4, %v1243_v19, %v1227_v26  ;;  %v1199_v13 = vpop.permute.xlu0 %1198 }
 0x7cd   : > { %2698 = vmatmul.msk.f32.gmra.mxu2 %vm268_vm0, %v1916_v51  ;;  %2718 = vmatmul.msk.f32.gmra.mxu0 %vm268_vm0, %v2170_v29  ;;  %v1240_v43 = vsel %vm472_vm1, %v4445_v15, %v1199_v13 }
 0x7ce   : > { %2719 = vmatmul.msk.f32.vlgmr.msrb.gmra.mxu1 %vm268_vm0, %v1248_v37  ;;  %v2224_v34 = vpop.f32.mrf.mxu0 }
 0x7cf   : > { %2320 = vrot.lane.b32.xlu1 %v2224_v34, %s3051_s9 }
 0x7d0   : > { %v4296_v63 = vpop.f32.mrf.mxu2 }
 0x7d3   : > { %v1213_v47 = vpop.permute.xlu2 %1212 }
 0x7d4   : > { %v1244_v41 = vsel %vm1242_vm3, %v1239_v57, %v1213_v47  ;;  %v1201_v27 = vpop.permute.xlu0 %1200 }
 0x7d5   : > { %v1249_v60 = vsel %vm1247_vm4, %v1244_v41, %v1229_v16  ;;  %v1241_v55 = vsel %vm472_vm1, %v4446_v46, %v1201_v27 }
 0x7d6   : > { %2720 = vmatmul.msk.f32.gmra.mxu1 %vm268_vm0, %v1249_v60 }
 0x7d8   : > { %v4303_v14 = vpop.f32.mrf.mxu2 }
 0x7db   : > { %v1215_v62 = vpop.permute.xlu2 %1214 }
 0x7dc   : > { %v1245_v0 = vsel %vm1242_vm3, %v1240_v43, %v1215_v62  ;;  %v2257_v22 = vpop.permute.xlu0 %2256 }
 0x7dd   : > { %v1250_v31 = vsel %vm1247_vm4, %v1245_v0, %v1231_v18  ;;  %v2344_v20 = vsel %vm472_vm1, %v4280_v32, %v2257_v22 }
 0x7de   : > { %2721 = vmatmul.msk.f32.gmra.mxu1 %vm268_vm0, %v1250_v31 }
 0x7e0   : > { %v4310_v21 = vpop.f32.mrf.mxu2 }
 0x7e3   : > { %v1217_v4 = vpop.permute.xlu2 %1216 }
 0x7e4   : > { %v1246_v49 = vsel %vm1242_vm3, %v1241_v55, %v1217_v4  ;;  %v2259_v19 = vpop.permute.xlu0 %2258 }
 0x7e5   : > { %v1251_v40 = vsel %vm1247_vm4, %v1246_v49, %v1233_v8  ;;  %v2345_v29 = vsel %vm472_vm1, %v4286_v39, %v2259_v19 }
 0x7e6   : > { %2722 = vmatmul.msk.f32.gmra.mxu1 %vm268_vm0, %v1251_v40 }
 0x7e8   : > { %v4317_v38 = vpop.f32.mrf.mxu2 }
 0x7ec   : > { %v2261_v51 = vpop.permute.xlu0 %2260 }
 0x7ed   : > { %v2346_v57 = vsel %vm472_vm1, %v4296_v63, %v2261_v51 }
 0x7f0   : > { %v4319_v3 = vpop.f32.mrf.mxu2 }
 0x7f4   : > { %v2263_v2 = vpop.permute.xlu0 %2262 }
 0x7f5   : > { %v2347_v39 = vsel %vm472_vm1, %v4303_v14, %v2263_v2 }
 0x7f8   : > { %v4321_v30 = vpop.f32.mrf.mxu2 }
 0x7fc   : > { %v2265_v18 = vpop.permute.xlu0 %2264 }
 0x7fd   : > { %v2348_v0 = vsel %vm472_vm1, %v4310_v21, %v2265_v18 }
 0x800   : > { %v1970_v61 = vpop.f32.mrf.mxu2 }
 0x801   : > { %2288 = vrot.lane.b32.xlu2 %v1970_v61, %s3050_s8 }
 0x804   : > { %v2267_v55 = vpop.permute.xlu0 %2266 }
 0x805   : > { %v2349_v4 = vsel %vm472_vm1, %v4317_v38, %v2267_v55 }
 0x808   : > { %v1973_v33 = vpop.f32.mrf.mxu2 }
 0x809   : > { %2290 = vrot.lane.b32.xlu2 %v1973_v33, %s3050_s8 }
 0x80b   : > { %v2227_v50 = vpop.f32.mrf.mxu0 }
 0x80c   : > { %2322 = vrot.lane.b32.xlu1 %v2227_v50, %s3051_s9  ;;  %v2269_v21 = vpop.permute.xlu0 %2268 }
 0x80d   : > { %v2350_v33 = vsel %vm472_vm1, %v4319_v3, %v2269_v21 }
 0x810   : > { %v1976_v24 = vpop.f32.mrf.mxu2 }
 0x811   : > { %2292 = vrot.lane.b32.xlu2 %v1976_v24, %s3050_s8 }
 0x813   : > { %v2230_v42 = vpop.f32.mrf.mxu0 }
 0x814   : > { %2324 = vrot.lane.b32.xlu1 %v2230_v42, %s3051_s9  ;;  %v2271_v38 = vpop.permute.xlu0 %2270 }
 0x81b   : > { %v2233_v59 = vpop.f32.mrf.mxu0 }
 0x81c   : > { %2326 = vrot.lane.b32.xlu1 %v2233_v59, %s3051_s9 }
 0x81e   : > { %v1979_v17 = vpop.f32.mrf.mxu2 }
 0x81f   : > { %2294 = vrot.lane.b32.xlu2 %v1979_v17, %s3050_s8  ;;  %v2351_v17 = vsel %vm472_vm1, %v4321_v30, %v2271_v38 }
 0x823   : > { %v2236_v48 = vpop.f32.mrf.mxu0 }
 0x824   : > { %2328 = vrot.lane.b32.xlu1 %v2236_v48, %s3051_s9 }
 0x826   : > { %v1982_v1 = vpop.f32.mrf.mxu2 }
 0x827   : > { %2296 = vrot.lane.b32.xlu2 %v1982_v1, %s3050_s8 }
 0x82b   : > { %v2239_v11 = vpop.f32.mrf.mxu0 }
 0x82c   : > { %2330 = vrot.lane.b32.xlu1 %v2239_v11, %s3051_s9 }
 0x82e   : > { %v1985_v35 = vpop.f32.mrf.mxu2 }
 0x82f   : > { %2298 = vrot.lane.b32.xlu2 %v1985_v35, %s3050_s8 }
 0x833   : > { %v2242_v28 = vpop.f32.mrf.mxu0 }
 0x834   : > { %2332 = vrot.lane.b32.xlu1 %v2242_v28, %s3051_s9 }
 0x841   : > { %v2321_v6 = vpop.permute.xlu1 %2320 }
 0x848   : > { %v1988_v7 = vpop.f32.mrf.mxu2 }
 0x849   : > { %2300 = vrot.lane.b32.xlu2 %v1988_v7, %s3050_s8 }
 0x84a   : > { %v2245_v23 = vpop.f32.mrf.mxu0 }
 0x84b   : > { %v2429_v44 = vpop.f32.mrf.mxu1  ;;  %2334 = vrot.lane.b32.xlu1 %v2245_v23, %s3051_s9 }
 0x84c   : > { %v2430_v53 = vadd.f32 %v4338_v54, %v2429_v44 }
 0x84e   : > { %2465 = vst.msk [vmem:[%s4346_s26] sm:$0xff] %vm268_vm0, %v2430_v53 }
 0x850   : > { %v1991_v58 = vpop.f32.mrf.mxu2 }
 0x851   : > { %2302 = vrot.lane.b32.xlu2 %v1991_v58, %s3050_s8 }
 0x853   : > { %v2432_v25 = vpop.f32.mrf.mxu1 }
 0x854   : > { %v2433_v56 = vadd.f32 %v4338_v54, %v2432_v25 }
 0x856   : > { %2466 = vst.msk [vmem:[%s4346_s26 + $0x8] sm:$0xff] %vm268_vm0, %v2433_v56 }
 0x85b   : > { %v2435_v36 = vpop.f32.mrf.mxu1  ;;  %v2289_v5 = vpop.permute.xlu2 %2288 }
 0x85c   : > { %v2436_v10 = vadd.f32 %v4338_v54, %v2435_v36  ;;  %v2352_v45 = vsel %vm1242_vm3, %v2344_v20, %v2289_v5 }
 0x85d   : > { %v2360_v12 = vsel %vm1247_vm4, %v2352_v45, %v2321_v6 }
 0x85e   : > { %2467 = vst.msk [vmem:[%s4346_s26 + $0x10] sm:$0xff] %vm268_vm0, %v2436_v10  ;;  %2723 = vmatmul.msk.f32.gmra.mxu1 %vm268_vm0, %v2360_v12 }
 0x863   : > { %v2438_v52 = vpop.f32.mrf.mxu1  ;;  %v2291_v32 = vpop.permute.xlu2 %2290 }
 0x864   : > { %v2439_v26 = vadd.f32 %v4338_v54, %v2438_v52  ;;  %v2353_v9 = vsel %vm1242_vm3, %v2345_v29, %v2291_v32 }
 0x866   : > { %2468 = vst.msk [vmem:[%s4346_s26 + $0x18] sm:$0xff] %vm268_vm0, %v2439_v26 }
 0x86b   : > { %v2293_v34 = vpop.permute.xlu2 %2292 }
 0x86c   : > { %v2354_v47 = vsel %vm1242_vm3, %v2346_v57, %v2293_v34 }
 0x879   : > { %v2295_v60 = vpop.permute.xlu2 %2294 }
 0x87a   : > { %v2355_v15 = vsel %vm1242_vm3, %v2347_v39, %v2295_v60 }
 0x87e   : > { %v2323_v37 = vpop.permute.xlu1 %2322 }
 0x87f   : > { %v2361_v16 = vsel %vm1247_vm4, %v2353_v9, %v2323_v37 }
 0x880   : > { %2724 = vmatmul.msk.f32.gmra.mxu1 %vm268_vm0, %v2361_v16 }
 0x881   : > { %v2297_v63 = vpop.permute.xlu2 %2296 }
 0x882   : > { %v2356_v31 = vsel %vm1242_vm3, %v2348_v0, %v2297_v63 }
 0x886   : > { %v2325_v41 = vpop.permute.xlu1 %2324 }
 0x887   : > { %v2362_v13 = vsel %vm1247_vm4, %v2354_v47, %v2325_v41 }
 0x888   : > { %2725 = vmatmul.msk.f32.gmra.mxu1 %vm268_vm0, %v2362_v13 }
 0x889   : > { %v2299_v14 = vpop.permute.xlu2 %2298 }
 0x88a   : > { %v2357_v8 = vsel %vm1242_vm3, %v2349_v4, %v2299_v14 }
 0x88e   : > { %v2327_v43 = vpop.permute.xlu1 %2326 }
 0x88f   : > { %v2363_v62 = vsel %vm1247_vm4, %v2355_v15, %v2327_v43 }
 0x890   : > { %2726 = vmatmul.msk.f32.gmra.mxu1 %vm268_vm0, %v2363_v62 }
 0x896   : > { %v2329_v27 = vpop.permute.xlu1 %2328 }
 0x897   : > { %v2364_v46 = vsel %vm1247_vm4, %v2356_v31, %v2329_v27 }
 0x898   : > { %2727 = vmatmul.msk.f32.gmra.mxu1 %vm268_vm0, %v2364_v46 }
 0x89e   : > { %v2331_v49 = vpop.permute.xlu1 %2330 }
 0x89f   : > { %v2365_v40 = vsel %vm1247_vm4, %v2357_v8, %v2331_v49 }
 0x8a0   : > { %2728 = vmatmul.msk.f32.gmra.mxu1 %vm268_vm0, %v2365_v40 }
 0x8a3   : > { %v2301_v61 = vpop.permute.xlu2 %2300 }
 0x8a4   : > { %v2358_v50 = vsel %vm1242_vm3, %v2350_v33, %v2301_v61 }
 0x8a6   : > { %v2333_v24 = vpop.permute.xlu1 %2332 }
 0x8a7   : > { %v2366_v42 = vsel %vm1247_vm4, %v2358_v50, %v2333_v24 }
 0x8a8   : > { %2729 = vmatmul.msk.f32.gmra.mxu1 %vm268_vm0, %v2366_v42 }
 0x8ab   : > { %v2303_v59 = vpop.permute.xlu2 %2302 }
 0x8ac   : > { %v2359_v48 = vsel %vm1242_vm3, %v2351_v17, %v2303_v59 }
 0x8bd   : > { %v2335_v1 = vpop.permute.xlu1 %2334 }
 0x8be   : > { %v2367_v3 = vsel %vm1247_vm4, %v2359_v48, %v2335_v1 }
 0x8bf   : > { %2730 = vmatmul.msk.f32.gmra.mxu1 %vm268_vm0, %v2367_v3 }
 0x8db   : > { %v2441_v11 = vpop.f32.mrf.mxu1 }
 0x8dc   : > { %v2442_v35 = vadd.f32 %v4338_v54, %v2441_v11 }
 0x8de   : > { %2469 = vst.msk [vmem:[%s4346_s26 + $0x20] sm:$0xff] %vm268_vm0, %v2442_v35 }
 0x8fd   : > { %v2444_v28 = vpop.f32.mrf.mxu1 }
 0x8fe   : > { %v2445_v7 = vadd.f32 %v4338_v54, %v2444_v28 }
 0x900   : > { %2470 = vst.msk [vmem:[%s4346_s26 + $0x28] sm:$0xff] %vm268_vm0, %v2445_v7 }
 0x905   : > { %v2447_v30 = vpop.f32.mrf.mxu1 }
 0x906   : > { %v2448_v23 = vadd.f32 %v4338_v54, %v2447_v30 }
 0x908   : > { %2471 = vst.msk [vmem:[%s4346_s26 + $0x30] sm:$0xff] %vm268_vm0, %v2448_v23 }
 0x90d   : > { %v2450_v44 = vpop.f32.mrf.mxu1 }
 0x90e   : > { %v2451_v53 = vadd.f32 %v4338_v54, %v2450_v44 }
 0x910   : > { %2472 = vst.msk [vmem:[%s4346_s26 + $0x38] sm:$0xff] %vm268_vm0, %v2451_v53 }
 0x915   : > { %v2453_v58 = vpop.f32.mrf.mxu1 }
 0x916   : > { %v2454_v25 = vadd.f32 %v4338_v54, %v2453_v58 }
 0x918   : > { %2473 = vst.msk [vmem:[%s4346_s26 + $0x40] sm:$0xff] %vm268_vm0, %v2454_v25 }
 0x91d   : > { %v2456_v56 = vpop.f32.mrf.mxu1 }
 0x91e   : > { %v2457_v22 = vadd.f32 %v4338_v54, %v2456_v56 }
 0x920   : > { %2474 = vst.msk [vmem:[%s4346_s26 + $0x48] sm:$0xff] %vm268_vm0, %v2457_v22 }
 0x925   : > { %v2459_v20 = vpop.f32.mrf.mxu1 }
 0x926   : > { %v2460_v36 = vadd.f32 %v4338_v54, %v2459_v20 }
 0x928   : > { %2475 = vst.msk [vmem:[%s4346_s26 + $0x50] sm:$0xff] %vm268_vm0, %v2460_v36 }
 0x93c   : > { %v2462_v5 = vpop.f32.mrf.mxu1 }
 0x93d   : > { %v2463_v6 = vadd.f32 %v4338_v54, %v2462_v5 }
 0x93f   : > { %2476 = vst.msk [vmem:[%s4346_s26 + $0x58] sm:$0xff] %vm268_vm0, %v2463_v6 }
 0x940 PF: > { %s16_s21 = sadd.s32 1, %s3045_s21  }
 0x941   : > { %p13_p4 = scmp.ge.s32.totalorder %s16_s21, 4  }
 0x943   :  { %15 = sbr.rel (!%p13_p4) target bundleno = 1 (0x1), region = 74 }

</bundles_post_ra>
